<compile_context>
chip_gen: v5e
topology: v5e:2x2
jax: 0.10.0
libtpu: 0.0.40
codegen_flags: <defaults>
</compile_context>

<pallas_src>
import functools
import math

import jax
import jax.numpy as jnp
from jax import lax
from jax.experimental import pallas as pl
from jax.experimental.pallas import tpu as pltpu


# ----------------------------- attention kernel -----------------------------

def _attention_kernel(xq_ref, xk_ref, xv_ref,
                      wq_ref, wk_ref, wv_ref, wo_ref,
                      bq_ref, bk_ref, bv_ref, bo_ref,
                      out_ref, ctx_ref,
                      *, seq, d_model, heads):
    """One batch per grid step: projections, per-head attention, final_linear.

    Refs:
      xq/xk/xv : (1, S, D)   bf16 activations for batch b
      wq/wk/wv : (H, D, dk)  bf16 head-major projection weights (resident)
      wo       : (H, dk, D)  bf16 head-major output-projection weight (resident)
      bq/bk/bv : (H, 1, dk)  f32 projection biases
      bo       : (1, D)      f32 output-projection bias
      out      : (1, S, D)   f32 final_linear(x)
      ctx      : (1, S, D)   f32 concatenated-heads context x (consumed by DeCov)
    """
    dk = d_model // heads
    scale = 1.0 / math.sqrt(dk)

    x_q = xq_ref[0]                       # (S, D) bf16
    x_k = xk_ref[0]
    x_v = xv_ref[0]

    acc = jnp.zeros((seq, d_model), jnp.float32)   # final_linear accumulator

    for h in range(heads):                # static unroll; heads is small
        # True dk-wide projections via head-major weights (no lane masks).
        q_h = jnp.dot(x_q, wq_ref[h], preferred_element_type=jnp.float32) + bq_ref[h]
        k_h = jnp.dot(x_k, wk_ref[h], preferred_element_type=jnp.float32) + bk_ref[h]
        v_h = jnp.dot(x_v, wv_ref[h], preferred_element_type=jnp.float32) + bv_ref[h]

        # scores = q_h @ k_h^T / sqrt(dk); contract the last axes of both
        # operands directly (no explicit K transpose in the head loop).
        s = lax.dot_general(q_h.astype(jnp.bfloat16), k_h.astype(jnp.bfloat16),
                            (((1,), (1,)), ((), ())),
                            preferred_element_type=jnp.float32) * scale
        # TODO(synk): masked_fill path not implemented (mask=None only).
        # TODO(synk): production S -> flash-style online softmax over a KV grid axis.
        s = s - jnp.max(s, axis=-1, keepdims=True)
        p = jnp.exp(s)
        p = p / jnp.sum(p, axis=-1, keepdims=True)          # exact reciprocal, f32
        # dropout(p=0) is the identity.

        ctx_h = jnp.dot(p.astype(jnp.bfloat16), v_h.astype(jnp.bfloat16),
                        preferred_element_type=jnp.float32)  # (S, dk) f32

        # Head h's context lands directly in its lane block of the (S, D) slab.
        ctx_ref[0, :, h * dk:(h + 1) * dk] = ctx_h

        # final_linear folded per head: out += ctx_h @ Wo[h*dk:(h+1)*dk, :]
        acc = acc + jnp.dot(ctx_h.astype(jnp.bfloat16), wo_ref[h],
                            preferred_element_type=jnp.float32)

    out_ref[0] = acc + bo_ref[...]


# ------------------------------- DeCov kernel --------------------------------

def _decov_kernel(ctx_ref, decov_ref, *, batch):
    """DeCov loss over time slices t = 0 .. d_model (inclusive).

    ctx_ref  : (B, T, D) f32 context of the first T = d_model + 1 time steps
    decov_ref: (1, 1)    f32 scalar, SMEM
    Uses the Gram identity ||Yc^T Yc||_F^2 == ||Yc Yc^T||_F^2 (B x B products
    instead of D x D), vectorized over the (T, D) tiles.
    """
    y = [ctx_ref[b] for b in range(batch)]                   # each (T, D)
    mean = y[0]
    for b in range(1, batch):
        mean = mean + y[b]
    mean = mean * (1.0 / batch)
    yc = [yb - mean for yb in y]                             # centered over batch

    frob = jnp.zeros((), jnp.float32)
    for bi in range(batch):
        for ci in range(batch):
            g = jnp.sum(yc[bi] * yc[ci], axis=-1, keepdims=True)   # (T, 1)
            frob = frob + jnp.sum(g * g)

    dsq = yc[0] * yc[0]
    for b in range(1, batch):
        dsq = dsq + yc[b] * yc[b]                            # (T, D)
    diag = jnp.sum(dsq * dsq)

    coef = 0.5 / float((batch - 1) ** 2)                     # batch >= 2
    decov_ref[0, 0] = coef * (frob - diag)


# ------------------------------ module wrapper -------------------------------

def init_params(key, d_model):
    """Deterministic init mimicking nn.Linear default (U(-1/sqrt(in), 1/sqrt(in)))."""
    bound = 1.0 / math.sqrt(d_model)
    keys = jax.random.split(key, 8)

    def u(k, shape):
        return jax.random.uniform(k, shape, jnp.float32, -bound, bound)

    return dict(
        wq_t=u(keys[0], (d_model, d_model)), bq=u(keys[1], (1, d_model)),
        wk_t=u(keys[2], (d_model, d_model)), bk=u(keys[3], (1, d_model)),
        wv_t=u(keys[4], (d_model, d_model)), bv=u(keys[5], (1, d_model)),
        wo_t=u(keys[6], (d_model, d_model)), bo=u(keys[7], (1, d_model)),
    )


def multi_headed_attention(query, key, value, params, h, mask=None):
    assert mask is None   # TODO(synk): mask support not wired through the kernel
    b, s, d = query.shape
    assert d % h == 0
    dk = d // h
    assert s >= d + 1, "DeCov loop reads sequence index up to d_model inclusive"
    assert b >= 2, "DeCov cov() divides by (batch - 1)"

    # --- wrapper-side layout plumbing: bf16 MXU inputs, head-major weights ---
    xq = query.astype(jnp.bfloat16)
    xk = key.astype(jnp.bfloat16)
    xv = value.astype(jnp.bfloat16)

    def head_major_w(wt):          # (D, D) -> (H, D, dk): columns grouped by head
        return wt.reshape(d, h, dk).transpose(1, 0, 2).astype(jnp.bfloat16)

    def head_major_b(bias):        # (1, D) -> (H, 1, dk)
        return bias.reshape(h, dk)[:, None, :]

    wq = head_major_w(params["wq_t"])
    wk = head_major_w(params["wk_t"])
    wv = head_major_w(params["wv_t"])
    wo = params["wo_t"].reshape(h, dk, d).astype(jnp.bfloat16)   # rows grouped by head
    bq = head_major_b(params["bq"])
    bk = head_major_b(params["bk"])
    bv = head_major_b(params["bv"])
    bo = params["bo"]

    flops = 2 * (3 * b * s * d * d + 2 * b * h * s * s * dk + b * s * d * d)
    bytes_accessed = (3 * b * s * d * 2 + 4 * d * d * 2 + 4 * d * 4
                      + 2 * b * s * d * 4)
    cost = pl.CostEstimate(flops=flops, transcendentals=b * h * s * s,
                           bytes_accessed=bytes_accessed)

    batch_block = lambda i: (i, 0, 0)
    resident3 = lambda i: (0, 0, 0)

    out, ctx = pl.pallas_call(
        functools.partial(_attention_kernel, seq=s, d_model=d, heads=h),
        out_shape=(jax.ShapeDtypeStruct((b, s, d), jnp.float32),   # final_linear(x)
                   jax.ShapeDtypeStruct((b, s, d), jnp.float32)),  # context x (for DeCov)
        grid=(b,),
        in_specs=[
            pl.BlockSpec((1, s, d), batch_block),      # xq
            pl.BlockSpec((1, s, d), batch_block),      # xk
            pl.BlockSpec((1, s, d), batch_block),      # xv
            pl.BlockSpec((h, d, dk), resident3),       # wq (resident)
            pl.BlockSpec((h, d, dk), resident3),       # wk (resident)
            pl.BlockSpec((h, d, dk), resident3),       # wv (resident)
            pl.BlockSpec((h, dk, d), resident3),       # wo (resident)
            pl.BlockSpec((h, 1, dk), resident3),       # bq
            pl.BlockSpec((h, 1, dk), resident3),       # bk
            pl.BlockSpec((h, 1, dk), resident3),       # bv
            pl.BlockSpec((1, d), lambda i: (0, 0)),    # bo
        ],
        out_specs=(pl.BlockSpec((1, s, d), batch_block),
                   pl.BlockSpec((1, s, d), batch_block)),
        compiler_params=pltpu.CompilerParams(
            # batch axis is independent -> shards across v7x's two TensorCores
            dimension_semantics=("parallel",),
            # explicit scoped-VMEM budget; TODO(synk): re-derive for v7x (64 MiB)
            # together with production tile sizes.
            vmem_limit_bytes=32 * 1024 * 1024),
        cost_estimate=cost,
    )(xq, xk, xv, wq, wk, wv, wo, bq, bk, bv, bo)

    # --- DeCov: tiny batch-coupled kernel over the first d+1 time steps ---
    t = d + 1
    ctx_top = ctx[:, :t, :]
    decov = pl.pallas_call(
        functools.partial(_decov_kernel, batch=b),
        out_shape=jax.ShapeDtypeStruct((1, 1), jnp.float32),
        grid=(1,),
        in_specs=[pl.BlockSpec((b, t, d), lambda i: (0, 0, 0))],
        out_specs=pl.BlockSpec(memory_space=pltpu.MemorySpace.SMEM),  # scalar -> SMEM
        compiler_params=pltpu.CompilerParams(dimension_semantics=("arbitrary",)),
    )(ctx_top)

    return out, decov[0, 0]


# ----------------------------- pure-JAX reference ----------------------------

def reference(query, key, value, params, h):
    b, s, d = query.shape
    dk = d // h

    def lin(x, wt, bias):
        return x @ wt + bias

    def project(x, wt, bias):
        return lin(x, wt, bias).reshape(b, s, h, dk).transpose(0, 2, 1, 3)

    q = project(query, params["wq_t"], params["bq"])
    k = project(key, params["wk_t"], params["bk"])
    v = project(value, params["wv_t"], params["bv"])

    scores = jnp.einsum("bhqd,bhkd->bhqk", q, k) / math.sqrt(dk)
    p = jax.nn.softmax(scores, axis=-1)
    x = jnp.einsum("bhqk,bhkd->bhqd", p, v).transpose(0, 2, 1, 3).reshape(b, s, d)
    out = lin(x, params["wo_t"], params["bo"])

    dc = jnp.transpose(x, (1, 2, 0))   # (S, D, B)
    loss = jnp.float32(0.0)
    for t in range(d + 1):
        m = dc[t]                                       # (D, B)
        xc = m - jnp.mean(m, axis=1, keepdims=True)
        c = xc @ xc.T / (m.shape[1] - 1)
        loss = loss + 0.5 * (jnp.sum(c ** 2) - jnp.sum(jnp.diag(c) ** 2))
    return out, loss


# ------------------------------------ main ------------------------------------

if __name__ == "__main__":
    B, S, D, H = 2, 24, 16, 4   # S >= D + 1 required by the DeCov loop semantics

    root = jax.random.PRNGKey(0)
    kq, kk, kv, kp = jax.random.split(root, 4)
    query = jax.random.normal(kq, (B, S, D), jnp.float32)
    key_in = jax.random.normal(kk, (B, S, D), jnp.float32)
    value = jax.random.normal(kv, (B, S, D), jnp.float32)
    params = init_params(kp, D)

    out, decov = multi_headed_attention(query, key_in, value, params, H)
    out = jax.block_until_ready(out)
    decov = jax.block_until_ready(decov)

    ref_out, ref_decov = reference(query, key_in, value, params, H)
    # bf16 MXU inputs (activations/weights/probs) vs the f32 reference:
    # ~1e-2-level tolerance is expected and accepted here.
    assert jnp.allclose(out, ref_out, atol=2e-2, rtol=2e-2), "attention output mismatch"
    assert jnp.allclose(decov, ref_decov, atol=5e-2, rtol=5e-2), "DeCov loss mismatch"

    print("KERNEL_OK")
</pallas_src>

<mosaic_0001>
module attributes {stable_mosaic.version = 11 : i64} {
  func.func @_attention_kernel(%arg0: i32, %arg1: memref<1x24x16xbf16, #tpu.memory_space<vmem>>, %arg2: memref<1x24x16xbf16, #tpu.memory_space<vmem>>, %arg3: memref<1x24x16xbf16, #tpu.memory_space<vmem>>, %arg4: memref<4x16x4xbf16, #tpu.memory_space<vmem>>, %arg5: memref<4x16x4xbf16, #tpu.memory_space<vmem>>, %arg6: memref<4x16x4xbf16, #tpu.memory_space<vmem>>, %arg7: memref<4x4x16xbf16, #tpu.memory_space<vmem>>, %arg8: memref<4x1x4xf32, #tpu.memory_space<vmem>>, %arg9: memref<4x1x4xf32, #tpu.memory_space<vmem>>, %arg10: memref<4x1x4xf32, #tpu.memory_space<vmem>>, %arg11: memref<1x16xf32, #tpu.memory_space<vmem>>, %arg12: memref<1x24x16xf32, #tpu.memory_space<vmem>>, %arg13: memref<1x24x16xf32, #tpu.memory_space<vmem>>) attributes {dimension_semantics = [#tpu.dimension_semantics<parallel>], iteration_bounds = array<i64: 2>, scalar_prefetch = 0 : i64, scratch_operands = 0 : i64, tpu.core_type = #tpu.core_type<tc>, window_params = [{transform_indices = @transform_0, window_bounds = array<i64: 1, 24, 16>}, {transform_indices = @transform_1, window_bounds = array<i64: 1, 24, 16>}, {transform_indices = @transform_2, window_bounds = array<i64: 1, 24, 16>}, {pipeline_mode = #tpu.pipeline_mode<synchronous>, transform_indices = @transform_3, window_bounds = array<i64: 4, 16, 4>}, {pipeline_mode = #tpu.pipeline_mode<synchronous>, transform_indices = @transform_4, window_bounds = array<i64: 4, 16, 4>}, {pipeline_mode = #tpu.pipeline_mode<synchronous>, transform_indices = @transform_5, window_bounds = array<i64: 4, 16, 4>}, {pipeline_mode = #tpu.pipeline_mode<synchronous>, transform_indices = @transform_6, window_bounds = array<i64: 4, 4, 16>}, {pipeline_mode = #tpu.pipeline_mode<synchronous>, transform_indices = @transform_7, window_bounds = array<i64: 4, 1, 4>}, {pipeline_mode = #tpu.pipeline_mode<synchronous>, transform_indices = @transform_8, window_bounds = array<i64: 4, 1, 4>}, {pipeline_mode = #tpu.pipeline_mode<synchronous>, transform_indices = @transform_9, window_bounds = array<i64: 4, 1, 4>}, {pipeline_mode = #tpu.pipeline_mode<synchronous>, transform_indices = @transform_10, window_bounds = array<i64: 1, 16>}, {transform_indices = @transform_11, window_bounds = array<i64: 1, 24, 16>}, {transform_indices = @transform_12, window_bounds = array<i64: 1, 24, 16>}]} {
    %c0 = arith.constant 0 : index
    %c0_0 = arith.constant 0 : index
    %c0_1 = arith.constant 0 : index
    %0 = vector.load %arg1[%c0, %c0_0, %c0_1] : memref<1x24x16xbf16, #tpu.memory_space<vmem>>, vector<1x24x16xbf16>
    %1 = vector.shape_cast %0 : vector<1x24x16xbf16> to vector<24x16xbf16>
    %c0_2 = arith.constant 0 : index
    %c0_3 = arith.constant 0 : index
    %c0_4 = arith.constant 0 : index
    %2 = vector.load %arg2[%c0_2, %c0_3, %c0_4] : memref<1x24x16xbf16, #tpu.memory_space<vmem>>, vector<1x24x16xbf16>
    %3 = vector.shape_cast %2 : vector<1x24x16xbf16> to vector<24x16xbf16>
    %c0_5 = arith.constant 0 : index
    %c0_6 = arith.constant 0 : index
    %c0_7 = arith.constant 0 : index
    %4 = vector.load %arg3[%c0_5, %c0_6, %c0_7] : memref<1x24x16xbf16, #tpu.memory_space<vmem>>, vector<1x24x16xbf16>
    %5 = vector.shape_cast %4 : vector<1x24x16xbf16> to vector<24x16xbf16>
    %cst = arith.constant 0.000000e+00 : f32
    %6 = vector.broadcast %cst : f32 to vector<24x16xf32>
    %c0_8 = arith.constant 0 : index
    %c0_9 = arith.constant 0 : index
    %c0_10 = arith.constant 0 : index
    %7 = vector.load %arg4[%c0_8, %c0_9, %c0_10] : memref<4x16x4xbf16, #tpu.memory_space<vmem>>, vector<1x16x4xbf16>
    %8 = vector.shape_cast %7 : vector<1x16x4xbf16> to vector<16x4xbf16>
    %cst_11 = arith.constant dense<0.000000e+00> : vector<24x4xf32>
    %9 = tpu.matmul %1, %8, %cst_11 {dimension_numbers = #tpu.dot_dimension_numbers<[1], [0], [0], [1], [0, 0, 1, 1], [], []>} : vector<24x16xbf16>, vector<16x4xbf16>, vector<24x4xf32> -> vector<24x4xf32>
    %c0_12 = arith.constant 0 : index
    %c0_13 = arith.constant 0 : index
    %c0_14 = arith.constant 0 : index
    %10 = vector.load %arg8[%c0_12, %c0_13, %c0_14] : memref<4x1x4xf32, #tpu.memory_space<vmem>>, vector<1x1x4xf32>
    %11 = vector.shape_cast %10 : vector<1x1x4xf32> to vector<1x4xf32>
    %12 = vector.broadcast %11 : vector<1x4xf32> to vector<24x4xf32>
    %13 = arith.addf %9, %12 : vector<24x4xf32>
    %c0_15 = arith.constant 0 : index
    %c0_16 = arith.constant 0 : index
    %c0_17 = arith.constant 0 : index
    %14 = vector.load %arg5[%c0_15, %c0_16, %c0_17] : memref<4x16x4xbf16, #tpu.memory_space<vmem>>, vector<1x16x4xbf16>
    %15 = vector.shape_cast %14 : vector<1x16x4xbf16> to vector<16x4xbf16>
    %cst_18 = arith.constant dense<0.000000e+00> : vector<24x4xf32>
    %16 = tpu.matmul %3, %15, %cst_18 {dimension_numbers = #tpu.dot_dimension_numbers<[1], [0], [0], [1], [0, 0, 1, 1], [], []>} : vector<24x16xbf16>, vector<16x4xbf16>, vector<24x4xf32> -> vector<24x4xf32>
    %c0_19 = arith.constant 0 : index
    %c0_20 = arith.constant 0 : index
    %c0_21 = arith.constant 0 : index
    %17 = vector.load %arg9[%c0_19, %c0_20, %c0_21] : memref<4x1x4xf32, #tpu.memory_space<vmem>>, vector<1x1x4xf32>
    %18 = vector.shape_cast %17 : vector<1x1x4xf32> to vector<1x4xf32>
    %19 = vector.broadcast %18 : vector<1x4xf32> to vector<24x4xf32>
    %20 = arith.addf %16, %19 : vector<24x4xf32>
    %c0_22 = arith.constant 0 : index
    %c0_23 = arith.constant 0 : index
    %c0_24 = arith.constant 0 : index
    %21 = vector.load %arg6[%c0_22, %c0_23, %c0_24] : memref<4x16x4xbf16, #tpu.memory_space<vmem>>, vector<1x16x4xbf16>
    %22 = vector.shape_cast %21 : vector<1x16x4xbf16> to vector<16x4xbf16>
    %cst_25 = arith.constant dense<0.000000e+00> : vector<24x4xf32>
    %23 = tpu.matmul %5, %22, %cst_25 {dimension_numbers = #tpu.dot_dimension_numbers<[1], [0], [0], [1], [0, 0, 1, 1], [], []>} : vector<24x16xbf16>, vector<16x4xbf16>, vector<24x4xf32> -> vector<24x4xf32>
    %c0_26 = arith.constant 0 : index
    %c0_27 = arith.constant 0 : index
    %c0_28 = arith.constant 0 : index
    %24 = vector.load %arg10[%c0_26, %c0_27, %c0_28] : memref<4x1x4xf32, #tpu.memory_space<vmem>>, vector<1x1x4xf32>
    %25 = vector.shape_cast %24 : vector<1x1x4xf32> to vector<1x4xf32>
    %26 = vector.broadcast %25 : vector<1x4xf32> to vector<24x4xf32>
    %27 = arith.addf %23, %26 : vector<24x4xf32>
    %28 = arith.truncf %13 : vector<24x4xf32> to vector<24x4xbf16>
    %29 = arith.truncf %20 : vector<24x4xf32> to vector<24x4xbf16>
    %cst_29 = arith.constant dense<0.000000e+00> : vector<24x24xf32>
    %30 = tpu.matmul %28, %29, %cst_29 {dimension_numbers = #tpu.dot_dimension_numbers<[1], [1], [0], [0], [0, 0, 1, 0], [], []>} : vector<24x4xbf16>, vector<24x4xbf16>, vector<24x24xf32> -> vector<24x24xf32>
    %cst_30 = arith.constant 5.000000e-01 : f32
    %31 = vector.broadcast %cst_30 : f32 to vector<24x24xf32>
    %32 = arith.mulf %30, %31 : vector<24x24xf32>
    %cst_31 = arith.constant dense<0xFF800000> : vector<24xf32>
    %33 = vector.multi_reduction <maximumf>, %32, %cst_31 [1] : vector<24x24xf32> to vector<24xf32>
    %34 = vector.shape_cast %33 : vector<24xf32> to vector<24x1xf32>
    %35 = vector.broadcast %34 : vector<24x1xf32> to vector<24x24xf32>
    %36 = arith.subf %32, %35 : vector<24x24xf32>
    %37 = math.exp %36 : vector<24x24xf32>
    %cst_32 = arith.constant dense<0.000000e+00> : vector<24xf32>
    %38 = vector.multi_reduction <add>, %37, %cst_32 [1] : vector<24x24xf32> to vector<24xf32>
    %39 = vector.shape_cast %38 : vector<24xf32> to vector<24x1xf32>
    %40 = vector.broadcast %39 : vector<24x1xf32> to vector<24x24xf32>
    %41 = arith.divf %37, %40 : vector<24x24xf32>
    %42 = arith.truncf %41 : vector<24x24xf32> to vector<24x24xbf16>
    %43 = arith.truncf %27 : vector<24x4xf32> to vector<24x4xbf16>
    %cst_33 = arith.constant dense<0.000000e+00> : vector<24x4xf32>
    %44 = tpu.matmul %42, %43, %cst_33 {dimension_numbers = #tpu.dot_dimension_numbers<[1], [0], [0], [1], [0, 0, 1, 1], [], []>} : vector<24x24xbf16>, vector<24x4xbf16>, vector<24x4xf32> -> vector<24x4xf32>
    %c0_34 = arith.constant 0 : index
    %c0_35 = arith.constant 0 : index
    %c0_36 = arith.constant 0 : index
    %45 = vector.load %arg13[%c0_34, %c0_35, %c0_36] : memref<1x24x16xf32, #tpu.memory_space<vmem>>, vector<1x24x4xf32>
    %46 = vector.shape_cast %45 : vector<1x24x4xf32> to vector<24x4xf32>
    %47 = vector.shape_cast %44 : vector<24x4xf32> to vector<1x24x4xf32>
    tpu.vector_store %arg13[%c0_34, %c0_35, %c0_36], %47 {strides = array<i32>} : memref<1x24x16xf32, #tpu.memory_space<vmem>>, vector<1x24x4xf32>,
    %48 = arith.truncf %44 : vector<24x4xf32> to vector<24x4xbf16>
    %c0_37 = arith.constant 0 : index
    %c0_38 = arith.constant 0 : index
    %c0_39 = arith.constant 0 : index
    %49 = vector.load %arg7[%c0_37, %c0_38, %c0_39] : memref<4x4x16xbf16, #tpu.memory_space<vmem>>, vector<1x4x16xbf16>
    %50 = vector.shape_cast %49 : vector<1x4x16xbf16> to vector<4x16xbf16>
    %cst_40 = arith.constant dense<0.000000e+00> : vector<24x16xf32>
    %51 = tpu.matmul %48, %50, %cst_40 {dimension_numbers = #tpu.dot_dimension_numbers<[1], [0], [0], [1], [0, 0, 1, 1], [], []>} : vector<24x4xbf16>, vector<4x16xbf16>, vector<24x16xf32> -> vector<24x16xf32>
    %52 = arith.addf %6, %51 : vector<24x16xf32>
    %c1 = arith.constant 1 : index
    %c0_41 = arith.constant 0 : index
    %c0_42 = arith.constant 0 : index
    %53 = vector.load %arg4[%c1, %c0_41, %c0_42] : memref<4x16x4xbf16, #tpu.memory_space<vmem>>, vector<1x16x4xbf16>
    %54 = vector.shape_cast %53 : vector<1x16x4xbf16> to vector<16x4xbf16>
    %cst_43 = arith.constant dense<0.000000e+00> : vector<24x4xf32>
    %55 = tpu.matmul %1, %54, %cst_43 {dimension_numbers = #tpu.dot_dimension_numbers<[1], [0], [0], [1], [0, 0, 1, 1], [], []>} : vector<24x16xbf16>, vector<16x4xbf16>, vector<24x4xf32> -> vector<24x4xf32>
    %c1_44 = arith.constant 1 : index
    %c0_45 = arith.constant 0 : index
    %c0_46 = arith.constant 0 : index
    %56 = vector.load %arg8[%c1_44, %c0_45, %c0_46] : memref<4x1x4xf32, #tpu.memory_space<vmem>>, vector<1x1x4xf32>
    %57 = vector.shape_cast %56 : vector<1x1x4xf32> to vector<1x4xf32>
    %58 = vector.broadcast %57 : vector<1x4xf32> to vector<24x4xf32>
    %59 = arith.addf %55, %58 : vector<24x4xf32>
    %c1_47 = arith.constant 1 : index
    %c0_48 = arith.constant 0 : index
    %c0_49 = arith.constant 0 : index
    %60 = vector.load %arg5[%c1_47, %c0_48, %c0_49] : memref<4x16x4xbf16, #tpu.memory_space<vmem>>, vector<1x16x4xbf16>
    %61 = vector.shape_cast %60 : vector<1x16x4xbf16> to vector<16x4xbf16>
    %cst_50 = arith.constant dense<0.000000e+00> : vector<24x4xf32>
    %62 = tpu.matmul %3, %61, %cst_50 {dimension_numbers = #tpu.dot_dimension_numbers<[1], [0], [0], [1], [0, 0, 1, 1], [], []>} : vector<24x16xbf16>, vector<16x4xbf16>, vector<24x4xf32> -> vector<24x4xf32>
    %c1_51 = arith.constant 1 : index
    %c0_52 = arith.constant 0 : index
    %c0_53 = arith.constant 0 : index
    %63 = vector.load %arg9[%c1_51, %c0_52, %c0_53] : memref<4x1x4xf32, #tpu.memory_space<vmem>>, vector<1x1x4xf32>
    %64 = vector.shape_cast %63 : vector<1x1x4xf32> to vector<1x4xf32>
    %65 = vector.broadcast %64 : vector<1x4xf32> to vector<24x4xf32>
    %66 = arith.addf %62, %65 : vector<24x4xf32>
    %c1_54 = arith.constant 1 : index
    %c0_55 = arith.constant 0 : index
    %c0_56 = arith.constant 0 : index
    %67 = vector.load %arg6[%c1_54, %c0_55, %c0_56] : memref<4x16x4xbf16, #tpu.memory_space<vmem>>, vector<1x16x4xbf16>
    %68 = vector.shape_cast %67 : vector<1x16x4xbf16> to vector<16x4xbf16>
    %cst_57 = arith.constant dense<0.000000e+00> : vector<24x4xf32>
    %69 = tpu.matmul %5, %68, %cst_57 {dimension_numbers = #tpu.dot_dimension_numbers<[1], [0], [0], [1], [0, 0, 1, 1], [], []>} : vector<24x16xbf16>, vector<16x4xbf16>, vector<24x4xf32> -> vector<24x4xf32>
    %c1_58 = arith.constant 1 : index
    %c0_59 = arith.constant 0 : index
    %c0_60 = arith.constant 0 : index
    %70 = vector.load %arg10[%c1_58, %c0_59, %c0_60] : memref<4x1x4xf32, #tpu.memory_space<vmem>>, vector<1x1x4xf32>
    %71 = vector.shape_cast %70 : vector<1x1x4xf32> to vector<1x4xf32>
    %72 = vector.broadcast %71 : vector<1x4xf32> to vector<24x4xf32>
    %73 = arith.addf %69, %72 : vector<24x4xf32>
    %74 = arith.truncf %59 : vector<24x4xf32> to vector<24x4xbf16>
    %75 = arith.truncf %66 : vector<24x4xf32> to vector<24x4xbf16>
    %cst_61 = arith.constant dense<0.000000e+00> : vector<24x24xf32>
    %76 = tpu.matmul %74, %75, %cst_61 {dimension_numbers = #tpu.dot_dimension_numbers<[1], [1], [0], [0], [0, 0, 1, 0], [], []>} : vector<24x4xbf16>, vector<24x4xbf16>, vector<24x24xf32> -> vector<24x24xf32>
    %cst_62 = arith.constant 5.000000e-01 : f32
    %77 = vector.broadcast %cst_62 : f32 to vector<24x24xf32>
    %78 = arith.mulf %76, %77 : vector<24x24xf32>
    %cst_63 = arith.constant dense<0xFF800000> : vector<24xf32>
    %79 = vector.multi_reduction <maximumf>, %78, %cst_63 [1] : vector<24x24xf32> to vector<24xf32>
    %80 = vector.shape_cast %79 : vector<24xf32> to vector<24x1xf32>
    %81 = vector.broadcast %80 : vector<24x1xf32> to vector<24x24xf32>
    %82 = arith.subf %78, %81 : vector<24x24xf32>
    %83 = math.exp %82 : vector<24x24xf32>
    %cst_64 = arith.constant dense<0.000000e+00> : vector<24xf32>
    %84 = vector.multi_reduction <add>, %83, %cst_64 [1] : vector<24x24xf32> to vector<24xf32>
    %85 = vector.shape_cast %84 : vector<24xf32> to vector<24x1xf32>
    %86 = vector.broadcast %85 : vector<24x1xf32> to vector<24x24xf32>
    %87 = arith.divf %83, %86 : vector<24x24xf32>
    %88 = arith.truncf %87 : vector<24x24xf32> to vector<24x24xbf16>
    %89 = arith.truncf %73 : vector<24x4xf32> to vector<24x4xbf16>
    %cst_65 = arith.constant dense<0.000000e+00> : vector<24x4xf32>
    %90 = tpu.matmul %88, %89, %cst_65 {dimension_numbers = #tpu.dot_dimension_numbers<[1], [0], [0], [1], [0, 0, 1, 1], [], []>} : vector<24x24xbf16>, vector<24x4xbf16>, vector<24x4xf32> -> vector<24x4xf32>
    %c0_66 = arith.constant 0 : index
    %c0_67 = arith.constant 0 : index
    %c4 = arith.constant 4 : index
    %91 = vector.load %arg13[%c0_66, %c0_67, %c4] : memref<1x24x16xf32, #tpu.memory_space<vmem>>, vector<1x24x4xf32>
    %92 = vector.shape_cast %91 : vector<1x24x4xf32> to vector<24x4xf32>
    %93 = vector.shape_cast %90 : vector<24x4xf32> to vector<1x24x4xf32>
    tpu.vector_store %arg13[%c0_66, %c0_67, %c4], %93 {strides = array<i32>} : memref<1x24x16xf32, #tpu.memory_space<vmem>>, vector<1x24x4xf32>,
    %94 = arith.truncf %90 : vector<24x4xf32> to vector<24x4xbf16>
    %c1_68 = arith.constant 1 : index
    %c0_69 = arith.constant 0 : index
    %c0_70 = arith.constant 0 : index
    %95 = vector.load %arg7[%c1_68, %c0_69, %c0_70] : memref<4x4x16xbf16, #tpu.memory_space<vmem>>, vector<1x4x16xbf16>
    %96 = vector.shape_cast %95 : vector<1x4x16xbf16> to vector<4x16xbf16>
    %cst_71 = arith.constant dense<0.000000e+00> : vector<24x16xf32>
    %97 = tpu.matmul %94, %96, %cst_71 {dimension_numbers = #tpu.dot_dimension_numbers<[1], [0], [0], [1], [0, 0, 1, 1], [], []>} : vector<24x4xbf16>, vector<4x16xbf16>, vector<24x16xf32> -> vector<24x16xf32>
    %98 = arith.addf %52, %97 : vector<24x16xf32>
    %c2 = arith.constant 2 : index
    %c0_72 = arith.constant 0 : index
    %c0_73 = arith.constant 0 : index
    %99 = vector.load %arg4[%c2, %c0_72, %c0_73] : memref<4x16x4xbf16, #tpu.memory_space<vmem>>, vector<1x16x4xbf16>
    %100 = vector.shape_cast %99 : vector<1x16x4xbf16> to vector<16x4xbf16>
    %cst_74 = arith.constant dense<0.000000e+00> : vector<24x4xf32>
    %101 = tpu.matmul %1, %100, %cst_74 {dimension_numbers = #tpu.dot_dimension_numbers<[1], [0], [0], [1], [0, 0, 1, 1], [], []>} : vector<24x16xbf16>, vector<16x4xbf16>, vector<24x4xf32> -> vector<24x4xf32>
    %c2_75 = arith.constant 2 : index
    %c0_76 = arith.constant 0 : index
    %c0_77 = arith.constant 0 : index
    %102 = vector.load %arg8[%c2_75, %c0_76, %c0_77] : memref<4x1x4xf32, #tpu.memory_space<vmem>>, vector<1x1x4xf32>
    %103 = vector.shape_cast %102 : vector<1x1x4xf32> to vector<1x4xf32>
    %104 = vector.broadcast %103 : vector<1x4xf32> to vector<24x4xf32>
    %105 = arith.addf %101, %104 : vector<24x4xf32>
    %c2_78 = arith.constant 2 : index
    %c0_79 = arith.constant 0 : index
    %c0_80 = arith.constant 0 : index
    %106 = vector.load %arg5[%c2_78, %c0_79, %c0_80] : memref<4x16x4xbf16, #tpu.memory_space<vmem>>, vector<1x16x4xbf16>
    %107 = vector.shape_cast %106 : vector<1x16x4xbf16> to vector<16x4xbf16>
    %cst_81 = arith.constant dense<0.000000e+00> : vector<24x4xf32>
    %108 = tpu.matmul %3, %107, %cst_81 {dimension_numbers = #tpu.dot_dimension_numbers<[1], [0], [0], [1], [0, 0, 1, 1], [], []>} : vector<24x16xbf16>, vector<16x4xbf16>, vector<24x4xf32> -> vector<24x4xf32>
    %c2_82 = arith.constant 2 : index
    %c0_83 = arith.constant 0 : index
    %c0_84 = arith.constant 0 : index
    %109 = vector.load %arg9[%c2_82, %c0_83, %c0_84] : memref<4x1x4xf32, #tpu.memory_space<vmem>>, vector<1x1x4xf32>
    %110 = vector.shape_cast %109 : vector<1x1x4xf32> to vector<1x4xf32>
    %111 = vector.broadcast %110 : vector<1x4xf32> to vector<24x4xf32>
    %112 = arith.addf %108, %111 : vector<24x4xf32>
    %c2_85 = arith.constant 2 : index
    %c0_86 = arith.constant 0 : index
    %c0_87 = arith.constant 0 : index
    %113 = vector.load %arg6[%c2_85, %c0_86, %c0_87] : memref<4x16x4xbf16, #tpu.memory_space<vmem>>, vector<1x16x4xbf16>
    %114 = vector.shape_cast %113 : vector<1x16x4xbf16> to vector<16x4xbf16>
    %cst_88 = arith.constant dense<0.000000e+00> : vector<24x4xf32>
    %115 = tpu.matmul %5, %114, %cst_88 {dimension_numbers = #tpu.dot_dimension_numbers<[1], [0], [0], [1], [0, 0, 1, 1], [], []>} : vector<24x16xbf16>, vector<16x4xbf16>, vector<24x4xf32> -> vector<24x4xf32>
    %c2_89 = arith.constant 2 : index
    %c0_90 = arith.constant 0 : index
    %c0_91 = arith.constant 0 : index
    %116 = vector.load %arg10[%c2_89, %c0_90, %c0_91] : memref<4x1x4xf32, #tpu.memory_space<vmem>>, vector<1x1x4xf32>
    %117 = vector.shape_cast %116 : vector<1x1x4xf32> to vector<1x4xf32>
    %118 = vector.broadcast %117 : vector<1x4xf32> to vector<24x4xf32>
    %119 = arith.addf %115, %118 : vector<24x4xf32>
    %120 = arith.truncf %105 : vector<24x4xf32> to vector<24x4xbf16>
    %121 = arith.truncf %112 : vector<24x4xf32> to vector<24x4xbf16>
    %cst_92 = arith.constant dense<0.000000e+00> : vector<24x24xf32>
    %122 = tpu.matmul %120, %121, %cst_92 {dimension_numbers = #tpu.dot_dimension_numbers<[1], [1], [0], [0], [0, 0, 1, 0], [], []>} : vector<24x4xbf16>, vector<24x4xbf16>, vector<24x24xf32> -> vector<24x24xf32>
    %cst_93 = arith.constant 5.000000e-01 : f32
    %123 = vector.broadcast %cst_93 : f32 to vector<24x24xf32>
    %124 = arith.mulf %122, %123 : vector<24x24xf32>
    %cst_94 = arith.constant dense<0xFF800000> : vector<24xf32>
    %125 = vector.multi_reduction <maximumf>, %124, %cst_94 [1] : vector<24x24xf32> to vector<24xf32>
    %126 = vector.shape_cast %125 : vector<24xf32> to vector<24x1xf32>
    %127 = vector.broadcast %126 : vector<24x1xf32> to vector<24x24xf32>
    %128 = arith.subf %124, %127 : vector<24x24xf32>
    %129 = math.exp %128 : vector<24x24xf32>
    %cst_95 = arith.constant dense<0.000000e+00> : vector<24xf32>
    %130 = vector.multi_reduction <add>, %129, %cst_95 [1] : vector<24x24xf32> to vector<24xf32>
    %131 = vector.shape_cast %130 : vector<24xf32> to vector<24x1xf32>
    %132 = vector.broadcast %131 : vector<24x1xf32> to vector<24x24xf32>
    %133 = arith.divf %129, %132 : vector<24x24xf32>
    %134 = arith.truncf %133 : vector<24x24xf32> to vector<24x24xbf16>
    %135 = arith.truncf %119 : vector<24x4xf32> to vector<24x4xbf16>
    %cst_96 = arith.constant dense<0.000000e+00> : vector<24x4xf32>
    %136 = tpu.matmul %134, %135, %cst_96 {dimension_numbers = #tpu.dot_dimension_numbers<[1], [0], [0], [1], [0, 0, 1, 1], [], []>} : vector<24x24xbf16>, vector<24x4xbf16>, vector<24x4xf32> -> vector<24x4xf32>
    %c0_97 = arith.constant 0 : index
    %c0_98 = arith.constant 0 : index
    %c8 = arith.constant 8 : index
    %137 = vector.load %arg13[%c0_97, %c0_98, %c8] : memref<1x24x16xf32, #tpu.memory_space<vmem>>, vector<1x24x4xf32>
    %138 = vector.shape_cast %137 : vector<1x24x4xf32> to vector<24x4xf32>
    %139 = vector.shape_cast %136 : vector<24x4xf32> to vector<1x24x4xf32>
    tpu.vector_store %arg13[%c0_97, %c0_98, %c8], %139 {strides = array<i32>} : memref<1x24x16xf32, #tpu.memory_space<vmem>>, vector<1x24x4xf32>,
    %140 = arith.truncf %136 : vector<24x4xf32> to vector<24x4xbf16>
    %c2_99 = arith.constant 2 : index
    %c0_100 = arith.constant 0 : index
    %c0_101 = arith.constant 0 : index
    %141 = vector.load %arg7[%c2_99, %c0_100, %c0_101] : memref<4x4x16xbf16, #tpu.memory_space<vmem>>, vector<1x4x16xbf16>
    %142 = vector.shape_cast %141 : vector<1x4x16xbf16> to vector<4x16xbf16>
    %cst_102 = arith.constant dense<0.000000e+00> : vector<24x16xf32>
    %143 = tpu.matmul %140, %142, %cst_102 {dimension_numbers = #tpu.dot_dimension_numbers<[1], [0], [0], [1], [0, 0, 1, 1], [], []>} : vector<24x4xbf16>, vector<4x16xbf16>, vector<24x16xf32> -> vector<24x16xf32>
    %144 = arith.addf %98, %143 : vector<24x16xf32>
    %c3 = arith.constant 3 : index
    %c0_103 = arith.constant 0 : index
    %c0_104 = arith.constant 0 : index
    %145 = vector.load %arg4[%c3, %c0_103, %c0_104] : memref<4x16x4xbf16, #tpu.memory_space<vmem>>, vector<1x16x4xbf16>
    %146 = vector.shape_cast %145 : vector<1x16x4xbf16> to vector<16x4xbf16>
    %cst_105 = arith.constant dense<0.000000e+00> : vector<24x4xf32>
    %147 = tpu.matmul %1, %146, %cst_105 {dimension_numbers = #tpu.dot_dimension_numbers<[1], [0], [0], [1], [0, 0, 1, 1], [], []>} : vector<24x16xbf16>, vector<16x4xbf16>, vector<24x4xf32> -> vector<24x4xf32>
    %c3_106 = arith.constant 3 : index
    %c0_107 = arith.constant 0 : index
    %c0_108 = arith.constant 0 : index
    %148 = vector.load %arg8[%c3_106, %c0_107, %c0_108] : memref<4x1x4xf32, #tpu.memory_space<vmem>>, vector<1x1x4xf32>
    %149 = vector.shape_cast %148 : vector<1x1x4xf32> to vector<1x4xf32>
    %150 = vector.broadcast %149 : vector<1x4xf32> to vector<24x4xf32>
    %151 = arith.addf %147, %150 : vector<24x4xf32>
    %c3_109 = arith.constant 3 : index
    %c0_110 = arith.constant 0 : index
    %c0_111 = arith.constant 0 : index
    %152 = vector.load %arg5[%c3_109, %c0_110, %c0_111] : memref<4x16x4xbf16, #tpu.memory_space<vmem>>, vector<1x16x4xbf16>
    %153 = vector.shape_cast %152 : vector<1x16x4xbf16> to vector<16x4xbf16>
    %cst_112 = arith.constant dense<0.000000e+00> : vector<24x4xf32>
    %154 = tpu.matmul %3, %153, %cst_112 {dimension_numbers = #tpu.dot_dimension_numbers<[1], [0], [0], [1], [0, 0, 1, 1], [], []>} : vector<24x16xbf16>, vector<16x4xbf16>, vector<24x4xf32> -> vector<24x4xf32>
    %c3_113 = arith.constant 3 : index
    %c0_114 = arith.constant 0 : index
    %c0_115 = arith.constant 0 : index
    %155 = vector.load %arg9[%c3_113, %c0_114, %c0_115] : memref<4x1x4xf32, #tpu.memory_space<vmem>>, vector<1x1x4xf32>
    %156 = vector.shape_cast %155 : vector<1x1x4xf32> to vector<1x4xf32>
    %157 = vector.broadcast %156 : vector<1x4xf32> to vector<24x4xf32>
    %158 = arith.addf %154, %157 : vector<24x4xf32>
    %c3_116 = arith.constant 3 : index
    %c0_117 = arith.constant 0 : index
    %c0_118 = arith.constant 0 : index
    %159 = vector.load %arg6[%c3_116, %c0_117, %c0_118] : memref<4x16x4xbf16, #tpu.memory_space<vmem>>, vector<1x16x4xbf16>
    %160 = vector.shape_cast %159 : vector<1x16x4xbf16> to vector<16x4xbf16>
    %cst_119 = arith.constant dense<0.000000e+00> : vector<24x4xf32>
    %161 = tpu.matmul %5, %160, %cst_119 {dimension_numbers = #tpu.dot_dimension_numbers<[1], [0], [0], [1], [0, 0, 1, 1], [], []>} : vector<24x16xbf16>, vector<16x4xbf16>, vector<24x4xf32> -> vector<24x4xf32>
    %c3_120 = arith.constant 3 : index
    %c0_121 = arith.constant 0 : index
    %c0_122 = arith.constant 0 : index
    %162 = vector.load %arg10[%c3_120, %c0_121, %c0_122] : memref<4x1x4xf32, #tpu.memory_space<vmem>>, vector<1x1x4xf32>
    %163 = vector.shape_cast %162 : vector<1x1x4xf32> to vector<1x4xf32>
    %164 = vector.broadcast %163 : vector<1x4xf32> to vector<24x4xf32>
    %165 = arith.addf %161, %164 : vector<24x4xf32>
    %166 = arith.truncf %151 : vector<24x4xf32> to vector<24x4xbf16>
    %167 = arith.truncf %158 : vector<24x4xf32> to vector<24x4xbf16>
    %cst_123 = arith.constant dense<0.000000e+00> : vector<24x24xf32>
    %168 = tpu.matmul %166, %167, %cst_123 {dimension_numbers = #tpu.dot_dimension_numbers<[1], [1], [0], [0], [0, 0, 1, 0], [], []>} : vector<24x4xbf16>, vector<24x4xbf16>, vector<24x24xf32> -> vector<24x24xf32>
    %cst_124 = arith.constant 5.000000e-01 : f32
    %169 = vector.broadcast %cst_124 : f32 to vector<24x24xf32>
    %170 = arith.mulf %168, %169 : vector<24x24xf32>
    %cst_125 = arith.constant dense<0xFF800000> : vector<24xf32>
    %171 = vector.multi_reduction <maximumf>, %170, %cst_125 [1] : vector<24x24xf32> to vector<24xf32>
    %172 = vector.shape_cast %171 : vector<24xf32> to vector<24x1xf32>
    %173 = vector.broadcast %172 : vector<24x1xf32> to vector<24x24xf32>
    %174 = arith.subf %170, %173 : vector<24x24xf32>
    %175 = math.exp %174 : vector<24x24xf32>
    %cst_126 = arith.constant dense<0.000000e+00> : vector<24xf32>
    %176 = vector.multi_reduction <add>, %175, %cst_126 [1] : vector<24x24xf32> to vector<24xf32>
    %177 = vector.shape_cast %176 : vector<24xf32> to vector<24x1xf32>
    %178 = vector.broadcast %177 : vector<24x1xf32> to vector<24x24xf32>
    %179 = arith.divf %175, %178 : vector<24x24xf32>
    %180 = arith.truncf %179 : vector<24x24xf32> to vector<24x24xbf16>
    %181 = arith.truncf %165 : vector<24x4xf32> to vector<24x4xbf16>
    %cst_127 = arith.constant dense<0.000000e+00> : vector<24x4xf32>
    %182 = tpu.matmul %180, %181, %cst_127 {dimension_numbers = #tpu.dot_dimension_numbers<[1], [0], [0], [1], [0, 0, 1, 1], [], []>} : vector<24x24xbf16>, vector<24x4xbf16>, vector<24x4xf32> -> vector<24x4xf32>
    %c0_128 = arith.constant 0 : index
    %c0_129 = arith.constant 0 : index
    %c12 = arith.constant 12 : index
    %183 = vector.load %arg13[%c0_128, %c0_129, %c12] : memref<1x24x16xf32, #tpu.memory_space<vmem>>, vector<1x24x4xf32>
    %184 = vector.shape_cast %183 : vector<1x24x4xf32> to vector<24x4xf32>
    %185 = vector.shape_cast %182 : vector<24x4xf32> to vector<1x24x4xf32>
    tpu.vector_store %arg13[%c0_128, %c0_129, %c12], %185 {strides = array<i32>} : memref<1x24x16xf32, #tpu.memory_space<vmem>>, vector<1x24x4xf32>,
    %186 = arith.truncf %182 : vector<24x4xf32> to vector<24x4xbf16>
    %c3_130 = arith.constant 3 : index
    %c0_131 = arith.constant 0 : index
    %c0_132 = arith.constant 0 : index
    %187 = vector.load %arg7[%c3_130, %c0_131, %c0_132] : memref<4x4x16xbf16, #tpu.memory_space<vmem>>, vector<1x4x16xbf16>
    %188 = vector.shape_cast %187 : vector<1x4x16xbf16> to vector<4x16xbf16>
    %cst_133 = arith.constant dense<0.000000e+00> : vector<24x16xf32>
    %189 = tpu.matmul %186, %188, %cst_133 {dimension_numbers = #tpu.dot_dimension_numbers<[1], [0], [0], [1], [0, 0, 1, 1], [], []>} : vector<24x4xbf16>, vector<4x16xbf16>, vector<24x16xf32> -> vector<24x16xf32>
    %190 = arith.addf %144, %189 : vector<24x16xf32>
    %c0_134 = arith.constant 0 : index
    %c0_135 = arith.constant 0 : index
    %191 = vector.load %arg11[%c0_134, %c0_135] : memref<1x16xf32, #tpu.memory_space<vmem>>, vector<1x16xf32>
    %192 = vector.broadcast %191 : vector<1x16xf32> to vector<24x16xf32>
    %193 = arith.addf %190, %192 : vector<24x16xf32>
    %c0_136 = arith.constant 0 : index
    %c0_137 = arith.constant 0 : index
    %c0_138 = arith.constant 0 : index
    %194 = vector.load %arg12[%c0_136, %c0_137, %c0_138] : memref<1x24x16xf32, #tpu.memory_space<vmem>>, vector<1x24x16xf32>
    %195 = vector.shape_cast %194 : vector<1x24x16xf32> to vector<24x16xf32>
    %196 = vector.shape_cast %193 : vector<24x16xf32> to vector<1x24x16xf32>
    tpu.vector_store %arg12[%c0_136, %c0_137, %c0_138], %196 {strides = array<i32>} : memref<1x24x16xf32, #tpu.memory_space<vmem>>, vector<1x24x16xf32>,
    return
  }
  func.func @transform_0(%arg0: i32) -> (i32, i32, i32) {
    %c0_i32 = arith.constant 0 : i32
    %c0_i32_0 = arith.constant 0 : i32
    %c0_i32_1 = arith.constant 0 : i32
    return %arg0, %c0_i32, %c0_i32_0 : i32, i32, i32
  }
  func.func @transform_1(%arg0: i32) -> (i32, i32, i32) {
    %c0_i32 = arith.constant 0 : i32
    %c0_i32_0 = arith.constant 0 : i32
    %c0_i32_1 = arith.constant 0 : i32
    return %arg0, %c0_i32, %c0_i32_0 : i32, i32, i32
  }
  func.func @transform_2(%arg0: i32) -> (i32, i32, i32) {
    %c0_i32 = arith.constant 0 : i32
    %c0_i32_0 = arith.constant 0 : i32
    %c0_i32_1 = arith.constant 0 : i32
    return %arg0, %c0_i32, %c0_i32_0 : i32, i32, i32
  }
  func.func @transform_3(%arg0: i32) -> (i32, i32, i32) {
    %c0_i32 = arith.constant 0 : i32
    %c0_i32_0 = arith.constant 0 : i32
    %c0_i32_1 = arith.constant 0 : i32
    %c0_i32_2 = arith.constant 0 : i32
    return %c0_i32, %c0_i32_0, %c0_i32_1 : i32, i32, i32
  }
  func.func @transform_4(%arg0: i32) -> (i32, i32, i32) {
    %c0_i32 = arith.constant 0 : i32
    %c0_i32_0 = arith.constant 0 : i32
    %c0_i32_1 = arith.constant 0 : i32
    %c0_i32_2 = arith.constant 0 : i32
    return %c0_i32, %c0_i32_0, %c0_i32_1 : i32, i32, i32
  }
  func.func @transform_5(%arg0: i32) -> (i32, i32, i32) {
    %c0_i32 = arith.constant 0 : i32
    %c0_i32_0 = arith.constant 0 : i32
    %c0_i32_1 = arith.constant 0 : i32
    %c0_i32_2 = arith.constant 0 : i32
    return %c0_i32, %c0_i32_0, %c0_i32_1 : i32, i32, i32
  }
  func.func @transform_6(%arg0: i32) -> (i32, i32, i32) {
    %c0_i32 = arith.constant 0 : i32
    %c0_i32_0 = arith.constant 0 : i32
    %c0_i32_1 = arith.constant 0 : i32
    %c0_i32_2 = arith.constant 0 : i32
    return %c0_i32, %c0_i32_0, %c0_i32_1 : i32, i32, i32
  }
  func.func @transform_7(%arg0: i32) -> (i32, i32, i32) {
    %c0_i32 = arith.constant 0 : i32
    %c0_i32_0 = arith.constant 0 : i32
    %c0_i32_1 = arith.constant 0 : i32
    %c0_i32_2 = arith.constant 0 : i32
    return %c0_i32, %c0_i32_0, %c0_i32_1 : i32, i32, i32
  }
  func.func @transform_8(%arg0: i32) -> (i32, i32, i32) {
    %c0_i32 = arith.constant 0 : i32
    %c0_i32_0 = arith.constant 0 : i32
    %c0_i32_1 = arith.constant 0 : i32
    %c0_i32_2 = arith.constant 0 : i32
    return %c0_i32, %c0_i32_0, %c0_i32_1 : i32, i32, i32
  }
  func.func @transform_9(%arg0: i32) -> (i32, i32, i32) {
    %c0_i32 = arith.constant 0 : i32
    %c0_i32_0 = arith.constant 0 : i32
    %c0_i32_1 = arith.constant 0 : i32
    %c0_i32_2 = arith.constant 0 : i32
    return %c0_i32, %c0_i32_0, %c0_i32_1 : i32, i32, i32
  }
  func.func @transform_10(%arg0: i32) -> (i32, i32) {
    %c0_i32 = arith.constant 0 : i32
    %c0_i32_0 = arith.constant 0 : i32
    %c0_i32_1 = arith.constant 0 : i32
    return %c0_i32, %c0_i32_0 : i32, i32
  }
  func.func @transform_11(%arg0: i32) -> (i32, i32, i32) {
    %c0_i32 = arith.constant 0 : i32
    %c0_i32_0 = arith.constant 0 : i32
    %c0_i32_1 = arith.constant 0 : i32
    return %arg0, %c0_i32, %c0_i32_0 : i32, i32, i32
  }
  func.func @transform_12(%arg0: i32) -> (i32, i32, i32) {
    %c0_i32 = arith.constant 0 : i32
    %c0_i32_0 = arith.constant 0 : i32
    %c0_i32_1 = arith.constant 0 : i32
    return %arg0, %c0_i32, %c0_i32_0 : i32, i32, i32
  }
}

</mosaic_0001>

<bundles_post_ra>
// kernel: tpu_custom_call.1
= control target key start
LH: loop header
LB: loop body
LE: loop exit
PB: predicated region body
PF: predicated region fallthrough
CT: control target
= control target key end

     0   :  { %s2079_s21 = smov 0   ;;  %s2444_s0 = inlined_call_operand.vmem [shape: bf16[2,24,16], index: 0, kind: input, shape index: {}]   ;;  %s2445_s1 = inlined_call_operand.vmem [shape: bf16[2,24,16], index: 1, kind: input, shape index: {}]   ;;  %s2446_s2 = inlined_call_operand.vmem [shape: bf16[2,24,16], index: 2, kind: input, shape index: {}]   ;;  %s2447_s3 = inlined_call_operand.vmem [shape: bf16[4,16,4], index: 3, kind: input, shape index: {}]   ;;  %s2448_s4 = inlined_call_operand.vmem [shape: bf16[4,16,4], index: 4, kind: input, shape index: {}]   ;;  %s2449_s5 = inlined_call_operand.vmem [shape: bf16[4,16,4], index: 5, kind: input, shape index: {}]   ;;  %s2450_s6 = inlined_call_operand.vmem [shape: bf16[4,4,16], index: 6, kind: input, shape index: {}]   ;;  %s2451_s7 = inlined_call_operand.vmem [shape: f32[4,1,4], index: 7, kind: input, shape index: {}]   ;;  %s2452_s8 = inlined_call_operand.vmem [shape: f32[4,1,4], index: 8, kind: input, shape index: {}]   ;;  %s2453_s9 = inlined_call_operand.vmem [shape: f32[4,1,4], index: 9, kind: input, shape index: {}]   ;;  %s2454_s10 = inlined_call_operand.vmem [shape: f32[1,16], index: 10, kind: input, shape index: {}]   ;;  %s2455_s11 = inlined_call_operand.vmem [shape: f32[2,24,16], index: 11, kind: output, shape index: {0}]   ;;  %s2456_s12 = inlined_call_operand.vmem [shape: f32[2,24,16], index: 12, kind: output, shape index: {1}]  }
   0x1 LB: > { %s1764_s22 = sadd.s32 4294967295, %s2009_s21   ;;  %p1768_p0 = scmp.ge.s32.totalorder %s2009_s21, 1  ;;  %s2009_s21 = sphi %s2079_s21, %s23_s21  }
   0x2   : > { %p385_p1 = scmp.lt.s32.totalorder %s2009_s21, 3 }
   0x4   : > { %p386_p2 = pnand %p1768_p0, %p385_p1 }
   0x5   : > { %p442_p3 = scmp.lt.s32.totalorder (!%p386_p2), %s1764_s22, 1  ;;  %s2013_s17 = smov (!%p386_p2), 12  }
   0x6   : > { %389 = sbr.rel (%p386_p2) target bundleno = 2490 (0x9ba), region = 64 }
   0xb   : > { %v1918_v0 = vld [vmem:[%s2448_s4] sm:$0xff]  ;;  %s2458_s22 = smov (!%p442_p3, %s1764_s22), 1  ;;  %vm497_vm0 = vcmask 130048   ;;  %vm614_vm1 = vcmask 31744   ;;  %v1921_v34 = vld [vmem:[%s2448_s4 + $0x8] sm:$0xff]  ;;  %vm648_vm2 = vcmask 195584  }
   0xc   : > { %v1917_v1 = vld [vmem:[%s2447_s3] sm:$0xff]  ;;  %555 = vmatpush.bf16.msra.mxu1 %v1918_v0  ;;  %s2096_s27 = smul.u32 12, %s2458_s22  ;;  %v1920_v48 = vld [vmem:[%s2447_s3 + $0x8] sm:$0xff]  ;;  %vm731_vm3 = vcmask 1043456  }
   0xd   : > { %511 = vmatpush.bf16.msra.mxu0 %v1917_v1  ;;  %v1942_v14 = vld [vmem:[%s2452_s8] ss:$0 sm:$0xff]  ;;  %s1930_s25 = smul.u32 24, %s2458_s22 }
   0xe   : > { %s451_s30 = scalar_lea.vmem %s2445_s1, %s2096_s27  ;;  %s446_s15 = scalar_lea.vmem %s2444_s0, %s2096_s27  ;;  %v1943_v25 = vld [vmem:[%s2451_s7] ss:$0 sm:$0xff] }
   0xf   : > { %v2106_v2 = vld [vmem:[%s451_s30] sm:$0xff]  ;;  %v473_v4 = vld [vmem:[%s451_s30 + $0x8] sm:$0xf]  ;;  %s456_s24 = scalar_lea.vmem %s2446_s2, %s2096_s27  ;;  %s2212_s29 = scalar_lea.vmem %s2456_s12, %s1930_s25 }
  0x10   : > { %v2108_v3 = vld [vmem:[%s446_s15] sm:$0xff]  ;;  %1792 = vmatmul.msk.bf16.vlgmr.msra.gmra.mxu1 %vm497_vm0, %v2106_v2  ;;  %v470_v5 = vld [vmem:[%s446_s15 + $0x8] sm:$0xf]  ;;  %v533_v6 = vunpack.c.l.b16 %v473_v4  ;;  %s2011_s27 = smov 4   ;;  %s2012_s30 = smov 8  }
  0x11   : > { %1782 = vmatmul.msk.bf16.vlgmr.msra.gmra.mxu0 %vm497_vm0, %v2108_v3  ;;  %v488_v7 = vunpack.c.l.b16 %v470_v5  ;;  %v1919_v32 = vld [vmem:[%s2449_s5] sm:$0xff]  ;;  %v476_v37 = vld [vmem:[%s456_s24 + $0x8] sm:$0xf]  ;;  %780 = vmatpush.bf16.msrb.mxu1 %v1920_v48 }
  0x12   : > { %v2114_v8 = vpack.c.b16 %v533_v6, %v533_v6  ;;  %v2139_v33 = vld [vmem:[%s456_s24] sm:$0xff]  ;;  %599 = vmatpush.bf16.msra.mxu2 %v1919_v32  ;;  %v577_v39 = vunpack.c.l.b16 %v476_v37  ;;  %s461_s24 = scalar_lea.vmem %s2455_s11, %s1930_s25 }
  0x13   : > { %v2116_v9 = vpack.c.b16 %v488_v7, %v488_v7  ;;  %v1944_v0 = vld [vmem:[%s2453_s9] ss:$0 sm:$0xff] }
  0x14   : > { %v2147_v42 = vpack.c.b16 %v577_v39, %v577_v39 }
  0x15   : > { %1802 = vmatmul.msk.bf16.vlgmr.msra.gmra.mxu2 %vm497_vm0, %v2139_v33 }
  0x16   : > { %812 = vmatpush.bf16.msrb.mxu2 %v1921_v34 }
  0x20   : > { %1793 = vmatmul.msk.bf16.gmra.mxu1 %vm497_vm0, %v2114_v8 }
  0x21   : > { %1783 = vmatmul.msk.bf16.gmra.mxu0 %vm497_vm0, %v2116_v9 }
  0x25   : > { %1803 = vmatmul.msk.bf16.gmra.mxu2 %vm497_vm0, %v2147_v42 }
  0x30   : > { %1815 = vmatmul.msk.bf16.vlgmr.msrb.gmra.mxu1 %vm497_vm0, %v2108_v3 }
  0x35   : > { %1824 = vmatmul.msk.bf16.vlgmr.msrb.gmra.mxu2 %vm497_vm0, %v2106_v2 }
  0x40   : > { %1816 = vmatmul.msk.bf16.gmra.mxu1 %vm497_vm0, %v2116_v9 }
  0x45   : > { %1825 = vmatmul.msk.bf16.gmra.mxu2 %vm497_vm0, %v2114_v8 }
  0x8d   : > { %v557_v10 = vpop.f32.mrf.mxu1 }
  0x8e   : > { %v513_v11 = vpop.f32.mrf.mxu0  ;;  %v558_v21 = vadd.f32 %v1942_v14, %v557_v10 }
  0x8f   : > { %v514_v27 = vadd.f32 %v1943_v25, %v513_v11 }
  0x95   : > { %v559_v12 = vpop.f32.mrf.mxu1 }
  0x96   : > { %v515_v13 = vpop.f32.mrf.mxu0  ;;  %v560_v19 = vadd.f32 %v1942_v14, %v559_v12 }
  0x97   : > { %v516_v28 = vadd.f32 %v1943_v25, %v515_v13 }
  0x98   : > { %v612_v24 = vpack.c.bf16 %v560_v19, %v558_v21  ;;  %v601_v54 = vpop.f32.mrf.mxu2 }
  0x99   : > { %v610_v29 = vpack.c.bf16 %v516_v28, %v514_v27  ;;  %v602_v6 = vadd.f32 %v1944_v0, %v601_v54 }
  0x9a   : > { %v622_v26 = vsel %vm614_vm1, %v612_v24, 0 }
  0x9d   : > { %v562_v15 = vpop.f32.mrf.mxu1 }
  0x9e   : > { %v518_v16 = vpop.f32.mrf.mxu0  ;;  %v563_v17 = vadd.f32 %v1942_v14, %v562_v15 }
  0x9f   : > { %v519_v30 = vadd.f32 %v1943_v25, %v518_v16 }
  0xa0   : > { %v613_v18 = vpack.c.bf16 %v563_v17, %v563_v17  ;;  %v603_v60 = vpop.f32.mrf.mxu2  ;;  %v1945_v17 = vld [vmem:[%s2452_s8 + $0x1] ss:$0 sm:$0xff] }
  0xa1   : > { %v611_v31 = vpack.c.bf16 %v519_v30, %v519_v30  ;;  %v604_v7 = vadd.f32 %v1944_v0, %v603_v60 }
  0xa2   : > { %v625_v20 = vsel %vm614_vm1, %v613_v18, 0 }
  0xa3   : > { %633 = vmatpush.bf16.xpose.msra.mxu3 %v625_v20  ;;  %v723_v13 = vpack.c.bf16 %v604_v7, %v602_v6 }
  0xa5   : > { %v564_v22 = vpop.f32.mrf.mxu1 }
  0xa6   : > { %v520_v23 = vpop.f32.mrf.mxu0 }
  0xa8   : > { %v606_v1 = vpop.f32.mrf.mxu2 }
  0xa9   : > { %v607_v4 = vadd.f32 %v1944_v0, %v606_v1 }
  0xab   : > { %634 = vmatpush.bf16.xpose.msra.mxu3 %v622_v26  ;;  %v724_v11 = vpack.c.bf16 %v607_v4, %v607_v4 }
  0xad   : > { %v733_v12 = vsel %vm731_vm3, %v724_v11, 0  ;;  %v782_v34 = vpop.f32.mrf.mxu1 }
  0xae   : > { %741 = vmatpush.bf16.msrb.mxu0 %v733_v12 }
  0xb0   : > { %v608_v14 = vpop.f32.mrf.mxu2 }
  0xb2   : > { %1804 = vmatmul.msk.bf16.vlgmr.msra.gmra.mxu3 %vm614_vm1, %v610_v29  ;;  %742 = vmatpush.bf16.msrb.mxu0 %v723_v13  ;;  %v1946_v13 = vld [vmem:[%s2451_s7 + $0x1] ss:$0 sm:$0xff] }
  0xb3   : > { %v783_v14 = vadd.f32 %v1946_v13, %v782_v34 }
  0xb8   : > { %v814_v15 = vpop.f32.mrf.mxu2 }
  0xb9   : > { %v815_v21 = vadd.f32 %v1945_v17, %v814_v15 }
  0xc0   : > { %v816_v16 = vpop.f32.mrf.mxu2 }
  0xc1   : > { %v817_v23 = vadd.f32 %v1945_v17, %v816_v16 }
  0xc2   : > { %1805 = vmatmul.msk.bf16.gmra.mxu3 %vm614_vm1, %v611_v31 }
  0xc3   : > { %v857_v25 = vpack.c.bf16 %v817_v23, %v815_v21 }
  0xc5   : > { %v866_v26 = vsel %vm614_vm1, %v857_v25, 0 }
  0xc8   : > { %v819_v18 = vpop.f32.mrf.mxu2 }
  0xc9   : > { %v820_v19 = vadd.f32 %v1945_v17, %v819_v18  ;;  %v758_v18 = vld [vmem:[%s2450_s6] sm:$0x3] }
  0xcb   : > { %v858_v20 = vpack.c.bf16 %v820_v19, %v820_v19 }
  0xcd   : > { %v869_v22 = vsel %vm614_vm1, %v858_v20, 0 }
  0xce   : > { %877 = vmatpush.bf16.xpose.msra.mxu0 %v869_v22 }
  0xd0   : > { %v821_v24 = vpop.f32.mrf.mxu2 }
  0xd6   : > { %878 = vmatpush.bf16.xpose.msra.mxu0 %v866_v26 }
 0x135   : > { %v636_v35 = vpop.f32.mrf.mxu3 }
 0x136   : > { %v645_v36 = vmul.f32 0.5, %v636_v35 }
 0x138   : > { %v649_v38 = vsel %vm648_vm2, %v645_v36, -inf }
 0x139   : > { %650 = vmax.xlane.f32.xlu0 %v649_v38 }
 0x13d   : > { %v638_v40 = vpop.f32.mrf.mxu3 }
 0x13e   : > { %v646_v41 = vmul.f32 0.5, %v638_v40 }
 0x140   : > { %v652_v43 = vsel %vm648_vm2, %v646_v41, -inf }
 0x141   : > { %653 = vmax.xlane.f32.xlu0 %v652_v43 }
 0x145   : > { %v641_v44 = vpop.f32.mrf.mxu3 }
 0x146   : > { %v647_v45 = vmul.f32 0.5, %v641_v44 }
 0x148   : > { %v655_v46 = vsel %vm648_vm2, %v647_v45, -inf }
 0x149   : > { %656 = vmax.xlane.f32.xlu1 %v655_v46 }
 0x14d   : > { %v643_v47 = vpop.f32.mrf.mxu3 }
 0x1ac   : > { %v651_v49 = vpop.xlane.xlu0 %650 }
 0x1ad   : > { %v658_v50 = vsub.f32 %v645_v36, %v651_v49  ;;  %v784_v49 = vpop.f32.mrf.mxu1 }
 0x1ae   : > { %v785_v15 = vadd.f32 %v1946_v13, %v784_v49 }
 0x1af   : > { %v661_v51 = vmul.f32 1.442695, %v658_v50 }
 0x1b1   : > { %1955 = vpow2.f32 %v661_v51 }
 0x1b4   : > { %v654_v52 = vpop.xlane.xlu0 %653 }
 0x1b5   : > { %v659_v53 = vsub.f32 %v646_v41, %v654_v52  ;;  %v787_v0 = vpop.f32.mrf.mxu1 }
 0x1b6   : > { %v788_v16 = vadd.f32 %v1946_v13, %v787_v0 }
 0x1b7   : > { %v2162_v55 = vpop.eup %1955  ;;  %v663_v56 = vmul.f32 1.442695, %v659_v53 }
 0x1b8   : > { %v667_v57 = vsel %vm648_vm2, %v2162_v55, 0.0  ;;  %v856_v17 = vpack.c.bf16 %v788_v16, %v788_v16 }
 0x1b9   : > { %1957 = vpow2.f32 %v663_v56  ;;  %668 = vadd.xlane.f32.xlu1 %v667_v57 }
 0x1bc   : > { %v657_v58 = vpop.xlane.xlu1 %656 }
 0x1bd   : > { %v660_v59 = vsub.f32 %v647_v45, %v657_v58  ;;  %v789_v11 = vpop.f32.mrf.mxu1 }
 0x1bf   : > { %v2168_v61 = vpop.eup %1957  ;;  %v665_v62 = vmul.f32 1.442695, %v660_v59 }
 0x1c0   : > { %v670_v63 = vsel %vm648_vm2, %v2168_v61, 0.0 }
 0x1c1   : > { %1959 = vpow2.f32 %v665_v62  ;;  %671 = vadd.xlane.f32.xlu2 %v670_v63 }
 0x1c7   : > { %v2175_v5 = vpop.eup %1959 }
 0x1c8   : > { %v673_v10 = vsel %vm648_vm2, %v2175_v5, 0.0 }
 0x1c9   : > { %674 = vadd.xlane.f32.xlu2 %v673_v10 }
 0x22c   : > { %v669_v27 = vpop.xlane.xlu1 %668 }
 0x22d   : > { %1961 = vrcp.f32 %v669_v27  ;;  %v687_v39 = vand.u32 2147483648, %v669_v27  ;;  %vm681_vm5 = vweird.f32 %v669_v27  ;;  %v685_v40 = vand.u32 2147483647, %v669_v27 }
 0x22f   : > { %v688_v47 = vor.u32 1.1754944e-38, %v687_v39  ;;  %vm686_vm8 = vcmp.eq.f32.partialorder %v685_v40, 8.507059e+37 }
 0x233   : > { %v1962_v28 = vpop.eup %1961 }
 0x234   : > { %v677_v29 = vmul.f32 %v1962_v28, %v669_v27  ;;  %v672_v30 = vpop.xlane.xlu2 %671  ;;  %vm682_vm4 = vweird.f32 %v1962_v28 }
 0x235   : > { %1963 = vrcp.f32 %v672_v30  ;;  %vm683_vm6 = vmor %vm681_vm5, %vm682_vm4  ;;  %v702_v43 = vand.u32 2147483648, %v672_v30  ;;  %v700_v46 = vand.u32 2147483647, %v672_v30  ;;  %vm696_vm9 = vweird.f32 %v672_v30 }
 0x236   : > { %v678_v31 = vsub.f32 1.0, %v677_v29  ;;  %vm1021_vm4 = vcmask 1041408  }
 0x237   : > { %v703_v51 = vor.u32 1.1754944e-38, %v702_v43  ;;  %vm701_vm11 = vcmp.eq.f32.partialorder %v700_v46, 8.507059e+37  ;;  %v1050_v19 = vsel %vm1021_vm4, %v758_v18, 0 }
 0x238   : > { %v679_v32 = vmul.f32 %v1962_v28, %v678_v31 }
 0x23a   : > { %v680_v36 = vadd.f32 %v1962_v28, %v679_v32  ;;  %v1947_v32 = vld [vmem:[%s2453_s9 + $0x1] ss:$0 sm:$0xff] }
 0x23b   : > { %v1964_v35 = vpop.eup %1963 }
 0x23c   : > { %v692_v37 = vmul.f32 %v1964_v35, %v672_v30  ;;  %v675_v38 = vpop.xlane.xlu2 %674  ;;  %v684_v44 = vsel %vm683_vm6, %v1962_v28, %v680_v36  ;;  %vm697_vm7 = vweird.f32 %v1964_v35 }
 0x23d   : > { %1965 = vrcp.f32 %v675_v38  ;;  %vm698_vm10 = vmor %vm696_vm9, %vm697_vm7  ;;  %v689_v52 = vsel %vm686_vm8, %v688_v47, %v684_v44  ;;  %v717_v1 = vand.u32 2147483648, %v675_v38  ;;  %vm711_vm13 = vweird.f32 %v675_v38 }
 0x23e   : > { %v693_v41 = vsub.f32 1.0, %v692_v37  ;;  %v690_v58 = vmul.f32 %v2162_v55, %v689_v52  ;;  %v715_v4 = vand.u32 2147483647, %v675_v38 }
 0x23f   : > { %v718_v7 = vor.u32 1.1754944e-38, %v717_v1 }
 0x240   : > { %v694_v45 = vmul.f32 %v1964_v35, %v693_v41  ;;  %vm716_vm15 = vcmp.eq.f32.partialorder %v715_v4, 8.507059e+37 }
 0x242   : > { %v695_v48 = vadd.f32 %v1964_v35, %v694_v45 }
 0x243   : > { %v1966_v50 = vpop.eup %1965 }
 0x244   : > { %v699_v53 = vsel %vm698_vm10, %v1964_v35, %v695_v48  ;;  %v707_v54 = vmul.f32 %v1966_v50, %v675_v38  ;;  %vm712_vm12 = vweird.f32 %v1966_v50 }
 0x245   : > { %v704_v56 = vsel %vm701_vm11, %v703_v51, %v699_v53  ;;  %vm713_vm14 = vmor %vm711_vm13, %vm712_vm12 }
 0x246   : > { %v708_v57 = vsub.f32 1.0, %v707_v54  ;;  %v705_v59 = vmul.f32 %v2168_v61, %v704_v56  ;;  %v1922_v61 = vld [vmem:[%s2449_s5 + $0x8] sm:$0xff] }
 0x247   : > { %844 = vmatpush.bf16.msrb.mxu3 %v1922_v61 }
 0x248   : > { %v709_v60 = vmul.f32 %v1966_v50, %v708_v57  ;;  %v721_v62 = vpack.c.bf16 %v705_v59, %v690_v58 }
 0x24a   : > { %1806 = vmatmul.msk.bf16.vlgmr.msrb.gmra.mxu0 %vm648_vm2, %v721_v62  ;;  %v710_v63 = vadd.f32 %v1966_v50, %v709_v60  ;;  %1833 = vmatmul.msk.bf16.vlgmr.msrb.gmra.mxu3 %vm497_vm0, %v2139_v33 }
 0x24b   : > { %1059 = vmatpush.bf16.msra.mxu3 %v1050_v19 }
 0x24c   : > { %v714_v6 = vsel %vm713_vm14, %v1966_v50, %v710_v63 }
 0x24d   : > { %v719_v10 = vsel %vm716_vm15, %v718_v7, %v714_v6 }
 0x24e   : > { %v720_v55 = vmul.f32 %v2175_v5, %v719_v10  ;;  %v855_v5 = vpack.c.bf16 %v785_v15, %v783_v14  ;;  %v1924_v15 = vld [vmem:[%s2448_s4 + $0x10] sm:$0xff] }
 0x250   : > { %v722_v12 = vpack.c.bf16 %v720_v55, %v720_v55 }
 0x25a   : > { %1807 = vmatmul.msk.bf16.gmra.mxu0 %vm648_vm2, %v722_v12  ;;  %1834 = vmatmul.msk.bf16.gmra.mxu3 %vm497_vm0, %v2147_v42 }
 0x26a   : > { %1835 = vmatmul.msk.bf16.vlgmr.msra.gmra.mxu0 %vm614_vm1, %v855_v5 }
 0x27a   : > { %1836 = vmatmul.msk.bf16.gmra.mxu0 %vm614_vm1, %v856_v17 }
 0x2c7   : > { %v744_v20 = vpop.f32.mrf.mxu0 }
 0x2c8   : > { %753 = vst.msk [vmem:[%s2212_s29] sm:$0xff] %vm614_vm1, %v744_v20 }
 0x2cd   : > { %v846_v26 = vpop.f32.mrf.mxu3 }
 0x2ce   : > { %v847_v38 = vadd.f32 %v1947_v32, %v846_v26 }
 0x2cf   : > { %v746_v21 = vpop.f32.mrf.mxu0 }
 0x2d0   : > { %754 = vst.msk [vmem:[%s2212_s29 + $0x8] sm:$0xff] %vm614_vm1, %v746_v21  ;;  %v756_v22 = vpack.c.bf16 %v746_v21, %v744_v20 }
 0x2d2   : > { %1842 = vmatmul.msk.bf16.vlgmr.msra.gmra.mxu3 %vm614_vm1, %v756_v22 }
 0x2d5   : > { %v848_v30 = vpop.f32.mrf.mxu3 }
 0x2d6   : > { %v849_v39 = vadd.f32 %v1947_v32, %v848_v30 }
 0x2d7   : > { %v749_v23 = vpop.f32.mrf.mxu0 }
 0x2d8   : > { %755 = vst.msk [vmem:[%s2212_s29 + $0x10] sm:$0xff] %vm614_vm1, %v749_v23  ;;  %v757_v25 = vpack.c.bf16 %v749_v23, %v749_v23  ;;  %v966_v45 = vpack.c.bf16 %v849_v39, %v847_v38 }
 0x2dd   : > { %v851_v36 = vpop.f32.mrf.mxu3 }
 0x2de   : > { %v852_v37 = vadd.f32 %v1947_v32, %v851_v36 }
 0x2df   : > { %v751_v24 = vpop.f32.mrf.mxu0 }
 0x2e0   : > { %v967_v40 = vpack.c.bf16 %v852_v37, %v852_v37 }
 0x2e2   : > { %1843 = vmatmul.msk.bf16.gmra.mxu3 %vm614_vm1, %v757_v25  ;;  %v975_v43 = vsel %vm731_vm3, %v967_v40, 0 }
 0x2e3   : > { %983 = vmatpush.bf16.msra.mxu1 %v975_v43 }
 0x2e5   : > { %v853_v47 = vpop.f32.mrf.mxu3 }
 0x2e7   : > { %v880_v27 = vpop.f32.mrf.mxu0  ;;  %984 = vmatpush.bf16.msra.mxu1 %v966_v45 }
 0x2e8   : > { %v889_v28 = vmul.f32 0.5, %v880_v27 }
 0x2ea   : > { %v892_v29 = vsel %vm648_vm2, %v889_v28, -inf }
 0x2eb   : > { %893 = vmax.xlane.f32.xlu0 %v892_v29  ;;  %1123 = vmatpush.bf16.msrb.mxu1 %v1924_v15 }
 0x2ef   : > { %v882_v31 = vpop.f32.mrf.mxu0 }
 0x2f0   : > { %v890_v34 = vmul.f32 0.5, %v882_v31 }
 0x2f2   : > { %v895_v35 = vsel %vm648_vm2, %v890_v34, -inf }
 0x2f3   : > { %896 = vmax.xlane.f32.xlu1 %v895_v35 }
 0x2f7   : > { %v885_v41 = vpop.f32.mrf.mxu0 }
 0x2f8   : > { %v891_v44 = vmul.f32 0.5, %v885_v41  ;;  %v1923_v41 = vld [vmem:[%s2447_s3 + $0x10] sm:$0xff] }
 0x2f9   : > { %1091 = vmatpush.bf16.msrb.mxu0 %v1923_v41 }
 0x2fa   : > { %v898_v46 = vsel %vm648_vm2, %v891_v44, -inf }
 0x2fb   : > { %899 = vmax.xlane.f32.xlu2 %v898_v46 }
 0x2fc   : > { %1851 = vmatmul.msk.bf16.vlgmr.msrb.gmra.mxu0 %vm497_vm0, %v2108_v3 }
 0x2ff   : > { %v887_v48 = vpop.f32.mrf.mxu0 }
 0x30c   : > { %1852 = vmatmul.msk.bf16.gmra.mxu0 %vm497_vm0, %v2116_v9 }
 0x355   : > { %v2229_v49 = vpop.f32.mrf.mxu3 }
 0x35d   : > { %v2231_v50 = vpop.f32.mrf.mxu3 }
 0x35e   : > { %v894_v51 = vpop.xlane.xlu0 %893 }
 0x35f   : > { %v901_v52 = vsub.f32 %v889_v28, %v894_v51 }
 0x361   : > { %v904_v53 = vmul.f32 1.442695, %v901_v52  ;;  %v1839_v52 = vld [vmem:[%s2450_s6 + $0x2] sm:$0x3] }
 0x363   : > { %1967 = vpow2.f32 %v904_v53  ;;  %v1023_v53 = vsel %vm1021_vm4, %v1839_v52, 0 }
 0x364   : > { %1032 = vmatpush.bf16.msra.mxu2 %v1023_v53 }
 0x365   : > { %v2233_v54 = vpop.f32.mrf.mxu3 }
 0x366   : > { %v897_v56 = vpop.xlane.xlu1 %896 }
 0x367   : > { %v902_v57 = vsub.f32 %v890_v34, %v897_v56 }
 0x369   : > { %v1968_v58 = vpop.eup %1967  ;;  %v906_v59 = vmul.f32 1.442695, %v902_v57 }
 0x36a   : > { %v910_v60 = vsel %vm648_vm2, %v1968_v58, 0.0 }
 0x36b   : > { %1969 = vpow2.f32 %v906_v59  ;;  %911 = vadd.xlane.f32.xlu0 %v910_v60 }
 0x36d   : > { %v1068_v62 = vpop.f32.mrf.mxu3 }
 0x36e   : > { %v900_v63 = vpop.xlane.xlu2 %899 }
 0x36f   : > { %v903_v0 = vsub.f32 %v891_v44, %v900_v63 }
 0x371   : > { %v1970_v1 = vpop.eup %1969  ;;  %v908_v4 = vmul.f32 1.442695, %v903_v0 }
 0x372   : > { %v913_v6 = vsel %vm648_vm2, %v1970_v1, 0.0 }
 0x373   : > { %1971 = vpow2.f32 %v908_v4  ;;  %914 = vadd.xlane.f32.xlu1 %v913_v6 }
 0x379   : > { %v1972_v7 = vpop.eup %1971  ;;  %v1093_v60 = vpop.f32.mrf.mxu0 }
 0x37a   : > { %v916_v10 = vsel %vm648_vm2, %v1972_v7, 0.0 }
 0x37b   : > { %917 = vadd.xlane.f32.xlu2 %v916_v10  ;;  %v1948_v10 = vld [vmem:[%s2452_s8 + $0x2] ss:$0 sm:$0xff] }
 0x381   : > { %v1095_v0 = vpop.f32.mrf.mxu0 }
 0x389   : > { %v1098_v4 = vpop.f32.mrf.mxu0 }
 0x3de   : > { %v912_v11 = vpop.xlane.xlu0 %911 }
 0x3df   : > { %1973 = vrcp.f32 %v912_v11  ;;  %v930_v19 = vand.u32 2147483648, %v912_v11  ;;  %vm924_vm6 = vweird.f32 %v912_v11  ;;  %v928_v20 = vand.u32 2147483647, %v912_v11 }
 0x3e1   : > { %v931_v26 = vor.u32 1.1754944e-38, %v930_v19  ;;  %vm929_vm9 = vcmp.eq.f32.partialorder %v928_v20, 8.507059e+37 }
 0x3e5   : > { %v1974_v55 = vpop.eup %1973 }
 0x3e6   : > { %v920_v12 = vmul.f32 %v1974_v55, %v912_v11  ;;  %v915_v61 = vpop.xlane.xlu1 %914  ;;  %vm925_vm5 = vweird.f32 %v1974_v55 }
 0x3e7   : > { %1975 = vrcp.f32 %v915_v61  ;;  %vm926_vm7 = vmor %vm924_vm6, %vm925_vm5  ;;  %v945_v22 = vand.u32 2147483648, %v915_v61  ;;  %v943_v25 = vand.u32 2147483647, %v915_v61  ;;  %vm939_vm10 = vweird.f32 %v915_v61 }
 0x3e8   : > { %v921_v13 = vsub.f32 1.0, %v920_v12 }
 0x3e9   : > { %v946_v30 = vor.u32 1.1754944e-38, %v945_v22  ;;  %vm944_vm12 = vcmp.eq.f32.partialorder %v943_v25, 8.507059e+37 }
 0x3ea   : > { %v922_v14 = vmul.f32 %v1974_v55, %v921_v13 }
 0x3ec   : > { %v923_v16 = vadd.f32 %v1974_v55, %v922_v14 }
 0x3ed   : > { %v1976_v5 = vpop.eup %1975 }
 0x3ee   : > { %v935_v17 = vmul.f32 %v1976_v5, %v915_v61  ;;  %v918_v18 = vpop.xlane.xlu2 %917  ;;  %v927_v23 = vsel %vm926_vm7, %v1974_v55, %v923_v16  ;;  %vm940_vm8 = vweird.f32 %v1976_v5  ;;  %v1949_v16 = vld [vmem:[%s2451_s7 + $0x2] ss:$0 sm:$0xff] }
 0x3ef   : > { %1977 = vrcp.f32 %v918_v18  ;;  %v932_v29 = vsel %vm929_vm9, %v931_v26, %v927_v23  ;;  %vm941_vm11 = vmor %vm939_vm10, %vm940_vm8  ;;  %v960_v43 = vand.u32 2147483648, %v918_v18  ;;  %vm954_vm14 = vweird.f32 %v918_v18 }
 0x3f0   : > { %v936_v21 = vsub.f32 1.0, %v935_v17  ;;  %v933_v35 = vmul.f32 %v1968_v58, %v932_v29  ;;  %v958_v44 = vand.u32 2147483647, %v918_v18  ;;  %v1096_v19 = vadd.f32 %v1949_v16, %v1095_v0 }
 0x3f1   : > { %v961_v46 = vor.u32 1.1754944e-38, %v960_v43 }
 0x3f2   : > { %v937_v24 = vmul.f32 %v1976_v5, %v936_v21  ;;  %vm959_vm5 = vcmp.eq.f32.partialorder %v958_v44, 8.507059e+37  ;;  %v1099_v21 = vadd.f32 %v1949_v16, %v1098_v4 }
 0x3f4   : > { %v938_v27 = vadd.f32 %v1976_v5, %v937_v24  ;;  %v1167_v22 = vpack.c.bf16 %v1099_v21, %v1099_v21 }
 0x3f5   : > { %v1978_v28 = vpop.eup %1977 }
 0x3f6   : > { %v942_v31 = vsel %vm941_vm11, %v1976_v5, %v938_v27  ;;  %v950_v32 = vmul.f32 %v1978_v28, %v918_v18  ;;  %vm955_vm13 = vweird.f32 %v1978_v28  ;;  %v1094_v18 = vadd.f32 %v1949_v16, %v1093_v60  ;;  %v1925_v27 = vld [vmem:[%s2449_s5 + $0x10] sm:$0xff] }
 0x3f7   : > { %v947_v34 = vsel %vm944_vm12, %v946_v30, %v942_v31  ;;  %vm956_vm15 = vmor %vm954_vm14, %vm955_vm13  ;;  %1155 = vmatpush.bf16.msrb.mxu2 %v1925_v27 }
 0x3f8   : > { %v948_v36 = vmul.f32 %v1970_v1, %v947_v34  ;;  %v951_v37 = vsub.f32 1.0, %v950_v32  ;;  %v1166_v20 = vpack.c.bf16 %v1096_v19, %v1094_v18 }
 0x3fa   : > { %v952_v38 = vmul.f32 %v1978_v28, %v951_v37  ;;  %v964_v39 = vpack.c.bf16 %v948_v36, %v933_v35 }
 0x3fc   : > { %1837 = vmatmul.msk.bf16.vlgmr.msra.gmra.mxu1 %vm648_vm2, %v964_v39  ;;  %v953_v40 = vadd.f32 %v1978_v28, %v952_v38 }
 0x3fe   : > { %v957_v45 = vsel %vm956_vm15, %v1978_v28, %v953_v40 }
 0x3ff   : > { %v962_v47 = vsel %vm959_vm5, %v961_v46, %v957_v45 }
 0x400   : > { %v963_v48 = vmul.f32 %v1972_v7, %v962_v47  ;;  %v1100_v7 = vpop.f32.mrf.mxu0 }
 0x402   : > { %v965_v51 = vpack.c.bf16 %v963_v48, %v963_v48 }
 0x40c   : > { %1838 = vmatmul.msk.bf16.gmra.mxu1 %vm648_vm2, %v965_v51 }
 0x41c   : > { %1860 = vmatmul.msk.bf16.vlgmr.msrb.gmra.mxu1 %vm497_vm0, %v2106_v2 }
 0x42c   : > { %1861 = vmatmul.msk.bf16.gmra.mxu1 %vm497_vm0, %v2114_v8 }
 0x479   : > { %v2258_v56 = vpop.f32.mrf.mxu1 }
 0x481   : > { %v2260_v57 = vpop.f32.mrf.mxu1 }
 0x482   : > { %v1011_v58 = vpack.c.bf16 %v2260_v57, %v2258_v56 }
 0x484   : > { %1840 = vmatmul.msk.bf16.vlgmr.msra.gmra.mxu2 %vm614_vm1, %v1011_v58 }
 0x489   : > { %v2265_v59 = vpop.f32.mrf.mxu1 }
 0x48a   : > { %v1012_v63 = vpack.c.bf16 %v2265_v59, %v2265_v59 }
 0x491   : > { %v993_v62 = vpop.f32.mrf.mxu1 }
 0x494   : > { %1841 = vmatmul.msk.bf16.gmra.mxu2 %vm614_vm1, %v1012_v63  ;;  %v1950_v63 = vld [vmem:[%s2453_s9 + $0x2] ss:$0 sm:$0xff] }
 0x499   : > { %v1125_v1 = vpop.f32.mrf.mxu1 }
 0x49a   : > { %v1126_v14 = vadd.f32 %v1948_v10, %v1125_v1 }
 0x4a1   : > { %v1127_v6 = vpop.f32.mrf.mxu1 }
 0x4a2   : > { %v1128_v61 = vadd.f32 %v1948_v10, %v1127_v6 }
 0x4a4   : > { %v1168_v5 = vpack.c.bf16 %v1128_v61, %v1126_v14  ;;  %1869 = vmatmul.msk.bf16.vlgmr.msrb.gmra.mxu2 %vm497_vm0, %v2139_v33  ;;  %v1926_v14 = vld [vmem:[%s2447_s3 + $0x18] sm:$0xff] }
 0x4a5   : > { %1377 = vmatpush.bf16.msra.mxu2 %v1926_v14 }
 0x4a6   : > { %v1177_v17 = vsel %vm614_vm1, %v1168_v5, 0 }
 0x4a9   : > { %v1130_v11 = vpop.f32.mrf.mxu1 }
 0x4aa   : > { %v1131_v55 = vadd.f32 %v1948_v10, %v1130_v11 }
 0x4ac   : > { %v1169_v12 = vpack.c.bf16 %v1131_v55, %v1131_v55 }
 0x4ae   : > { %v1180_v13 = vsel %vm614_vm1, %v1169_v12, 0 }
 0x4af   : > { %1188 = vmatpush.bf16.xpose.msrb.mxu3 %v1180_v13  ;;  %v1927_v13 = vld [vmem:[%s2448_s4 + $0x18] sm:$0xff] }
 0x4b1   : > { %v1132_v15 = vpop.f32.mrf.mxu1 }
 0x4b4   : > { %1870 = vmatmul.msk.bf16.gmra.mxu2 %vm497_vm0, %v2147_v42 }
 0x4b7   : > { %1189 = vmatpush.bf16.xpose.msrb.mxu3 %v1177_v17 }
 0x4be   : > { %1871 = vmatmul.msk.bf16.vlgmr.msrb.gmra.mxu3 %vm614_vm1, %v1166_v20 }
 0x4bf   : > { %1409 = vmatpush.bf16.msra.mxu3 %v1927_v13 }
 0x4c4   : > { %1885 = vmatmul.msk.bf16.vlgmr.msra.gmra.mxu2 %vm497_vm0, %v2108_v3 }
 0x4ce   : > { %1872 = vmatmul.msk.bf16.gmra.mxu3 %vm614_vm1, %v1167_v22 }
 0x4d4   : > { %1886 = vmatmul.msk.bf16.gmra.mxu2 %vm497_vm0, %v2116_v9 }
 0x4de   : > { %1894 = vmatmul.msk.bf16.vlgmr.msra.gmra.mxu3 %vm497_vm0, %v2106_v2 }
 0x4ee   : > { %1895 = vmatmul.msk.bf16.gmra.mxu3 %vm497_vm0, %v2114_v8 }
 0x507   : > { %v2280_v23 = vpop.f32.mrf.mxu2 }
 0x50f   : > { %v2282_v24 = vpop.f32.mrf.mxu2 }
 0x517   : > { %v2284_v25 = vpop.f32.mrf.mxu2 }
 0x51f   : > { %v1041_v26 = vpop.f32.mrf.mxu2 }
 0x527   : > { %v1157_v45 = vpop.f32.mrf.mxu2 }
 0x528   : > { %v1158_v6 = vadd.f32 %v1950_v63, %v1157_v45 }
 0x52f   : > { %v1159_v53 = vpop.f32.mrf.mxu2 }
 0x530   : > { %v1160_v7 = vadd.f32 %v1950_v63, %v1159_v53 }
 0x532   : > { %v1277_v12 = vpack.c.bf16 %v1160_v7, %v1158_v6 }
 0x537   : > { %v1162_v0 = vpop.f32.mrf.mxu2 }
 0x538   : > { %v1163_v1 = vadd.f32 %v1950_v63, %v1162_v0 }
 0x53a   : > { %v1278_v11 = vpack.c.bf16 %v1163_v1, %v1163_v1  ;;  %v1951_v1 = vld [vmem:[%s2452_s8 + $0x3] ss:$0 sm:$0xff] }
 0x53c   : > { %v1286_v55 = vsel %vm731_vm3, %v1278_v11, 0 }
 0x53d   : > { %1294 = vmatpush.bf16.msra.mxu0 %v1286_v55 }
 0x53f   : > { %v1164_v61 = vpop.f32.mrf.mxu2 }
 0x541   : > { %v1191_v28 = vpop.f32.mrf.mxu3  ;;  %1295 = vmatpush.bf16.msra.mxu0 %v1277_v12 }
 0x542   : > { %v1200_v29 = vmul.f32 0.5, %v1191_v28 }
 0x544   : > { %v1203_v30 = vsel %vm648_vm2, %v1200_v29, -inf }
 0x545   : > { %1204 = vmax.xlane.f32.xlu0 %v1203_v30 }
 0x547   : > { %v1379_v14 = vpop.f32.mrf.mxu2 }
 0x549   : > { %v1193_v31 = vpop.f32.mrf.mxu3 }
 0x54a   : > { %v1201_v32 = vmul.f32 0.5, %v1193_v31 }
 0x54c   : > { %v1206_v34 = vsel %vm648_vm2, %v1201_v32, -inf }
 0x54d   : > { %1207 = vmax.xlane.f32.xlu1 %v1206_v34 }
 0x551   : > { %v1196_v35 = vpop.f32.mrf.mxu3 }
 0x552   : > { %v1202_v36 = vmul.f32 0.5, %v1196_v35 }
 0x554   : > { %v1209_v37 = vsel %vm648_vm2, %v1202_v36, -inf }
 0x555   : > { %1210 = vmax.xlane.f32.xlu2 %v1209_v37 }
 0x559   : > { %v1198_v38 = vpop.f32.mrf.mxu3 }
 0x561   : > { %v1411_v63 = vpop.f32.mrf.mxu3 }
 0x569   : > { %v1413_v0 = vpop.f32.mrf.mxu3 }
 0x56a   : > { %v1414_v11 = vadd.f32 %v1951_v1, %v1413_v0 }
 0x571   : > { %v1416_v6 = vpop.f32.mrf.mxu3 }
 0x572   : > { %v1417_v7 = vadd.f32 %v1951_v1, %v1416_v6 }
 0x579   : > { %v1418_v61 = vpop.f32.mrf.mxu3 }
 0x5b8   : > { %v1205_v39 = vpop.xlane.xlu0 %1204 }
 0x5b9   : > { %v1212_v40 = vsub.f32 %v1200_v29, %v1205_v39 }
 0x5bb   : > { %v1215_v41 = vmul.f32 1.442695, %v1212_v40 }
 0x5bd   : > { %1979 = vpow2.f32 %v1215_v41 }
 0x5c0   : > { %v1208_v43 = vpop.xlane.xlu1 %1207 }
 0x5c1   : > { %v1213_v44 = vsub.f32 %v1201_v32, %v1208_v43 }
 0x5c3   : > { %v2296_v46 = vpop.eup %1979  ;;  %v1217_v47 = vmul.f32 1.442695, %v1213_v44 }
 0x5c4   : > { %v1221_v48 = vsel %vm648_vm2, %v2296_v46, 0.0 }
 0x5c5   : > { %1981 = vpow2.f32 %v1217_v47  ;;  %1222 = vadd.xlane.f32.xlu0 %v1221_v48 }
 0x5c8   : > { %v1211_v51 = vpop.xlane.xlu2 %1210 }
 0x5c9   : > { %v1214_v52 = vsub.f32 %v1202_v36, %v1211_v51 }
 0x5cb   : > { %v2300_v58 = vpop.eup %1981  ;;  %v1219_v60 = vmul.f32 1.442695, %v1214_v52 }
 0x5cc   : > { %v1224_v62 = vsel %vm648_vm2, %v2300_v58, 0.0 }
 0x5cd   : > { %1983 = vpow2.f32 %v1219_v60  ;;  %1225 = vadd.xlane.f32.xlu1 %v1224_v62 }
 0x5d3   : > { %v2307_v4 = vpop.eup %1983 }
 0x5d4   : > { %v1227_v10 = vsel %vm648_vm2, %v2307_v4, 0.0 }
 0x5d5   : > { %1228 = vadd.xlane.f32.xlu2 %v1227_v10  ;;  %v1455_v10 = vpack.c.bf16 %v1417_v7, %v1417_v7 }
 0x5d7   : > { %v1466_v55 = vsel %vm614_vm1, %v1455_v10, 0  ;;  %v1953_v10 = vld [vmem:[%s2453_s9 + $0x3] ss:$0 sm:$0xff] }
 0x638   : > { %v1223_v15 = vpop.xlane.xlu0 %1222 }
 0x639   : > { %1985 = vrcp.f32 %v1223_v15  ;;  %v1241_v22 = vand.u32 2147483648, %v1223_v15  ;;  %vm1235_vm7 = vweird.f32 %v1223_v15  ;;  %v1239_v26 = vand.u32 2147483647, %v1223_v15 }
 0x63b   : > { %v1242_v31 = vor.u32 1.1754944e-38, %v1241_v22  ;;  %vm1240_vm10 = vcmp.eq.f32.partialorder %v1239_v26, 8.507059e+37 }
 0x63f   : > { %v1986_v5 = vpop.eup %1985 }
 0x640   : > { %v1231_v16 = vmul.f32 %v1986_v5, %v1223_v15  ;;  %v1226_v17 = vpop.xlane.xlu1 %1225  ;;  %vm1236_vm6 = vweird.f32 %v1986_v5 }
 0x641   : > { %1987 = vrcp.f32 %v1226_v17  ;;  %vm1237_vm8 = vmor %vm1235_vm7, %vm1236_vm6  ;;  %v1256_v28 = vand.u32 2147483648, %v1226_v17  ;;  %v1254_v30 = vand.u32 2147483647, %v1226_v17  ;;  %vm1250_vm11 = vweird.f32 %v1226_v17 }
 0x642   : > { %v1232_v18 = vsub.f32 1.0, %v1231_v16  ;;  %vm1007_vm7 = vcmask 64544  }
 0x643   : > { %v1257_v36 = vor.u32 1.1754944e-38, %v1256_v28  ;;  %vm1255_vm13 = vcmp.eq.f32.partialorder %v1254_v30, 8.507059e+37 }
 0x644   : > { %v1233_v19 = vmul.f32 %v1986_v5, %v1232_v18 }
 0x646   : > { %v1234_v20 = vadd.f32 %v1986_v5, %v1233_v19 }
 0x647   : > { %v1988_v2 = vpop.eup %1987 }
 0x648   : > { %v1246_v8 = vmul.f32 %v1988_v2, %v1226_v17  ;;  %v1229_v21 = vpop.xlane.xlu2 %1228  ;;  %v1238_v3 = vsel %vm1237_vm8, %v1986_v5, %v1234_v20  ;;  %vm1251_vm9 = vweird.f32 %v1988_v2  ;;  %v1381_v5 = vpop.f32.mrf.mxu2 }
 0x649   : > { %1989 = vrcp.f32 %v1229_v21  ;;  %v1243_v35 = vsel %vm1240_vm10, %v1242_v31, %v1238_v3  ;;  %vm1252_vm12 = vmor %vm1250_vm11, %vm1251_vm9  ;;  %v1271_v47 = vand.u32 2147483648, %v1229_v21  ;;  %vm1265_vm15 = vweird.f32 %v1229_v21 }
 0x64a   : > { %v1247_v27 = vsub.f32 1.0, %v1246_v8  ;;  %v1244_v40 = vmul.f32 %v2296_v46, %v1243_v35  ;;  %v1269_v48 = vand.u32 2147483647, %v1229_v21 }
 0x64b   : > { %v1272_v52 = vor.u32 1.1754944e-38, %v1271_v47 }
 0x64c   : > { %v1248_v29 = vmul.f32 %v1988_v2, %v1247_v27  ;;  %vm1270_vm6 = vcmp.eq.f32.partialorder %v1269_v48, 8.507059e+37 }
 0x64e   : > { %v1249_v32 = vadd.f32 %v1988_v2, %v1248_v29  ;;  %v1062_v29 = vadd.f32 %v2229_v49, %v2280_v23  ;;  %v1928_v49 = vld [vmem:[%s2449_s5 + $0x18] sm:$0xff] }
 0x64f   : > { %v1990_v34 = vpop.eup %1989  ;;  %1441 = vmatpush.bf16.msrb.mxu0 %v1928_v49 }
 0x650   : > { %v1253_v37 = vsel %vm1252_vm12, %v1988_v2, %v1249_v32  ;;  %v1261_v38 = vmul.f32 %v1990_v34, %v1229_v21  ;;  %vm1266_vm14 = vweird.f32 %v1990_v34  ;;  %v1384_v18 = vpop.f32.mrf.mxu2  ;;  %v1952_v21 = vld [vmem:[%s2451_s7 + $0x3] ss:$0 sm:$0xff]  ;;  %v1064_v32 = vadd.f32 %v2231_v50, %v2282_v24 }
 0x651   : > { %v1258_v39 = vsel %vm1255_vm13, %v1257_v36, %v1253_v37  ;;  %vm1267_vm5 = vmor %vm1265_vm15, %vm1266_vm14  ;;  %v1380_v22 = vadd.f32 %v1952_v21, %v1379_v14  ;;  %v1382_v26 = vadd.f32 %v1952_v21, %v1381_v5  ;;  %v1385_v28 = vadd.f32 %v1952_v21, %v1384_v18 }
 0x652   : > { %v1259_v9 = vmul.f32 %v2300_v58, %v1258_v39  ;;  %v1262_v41 = vsub.f32 1.0, %v1261_v38  ;;  %v1875_v58 = vld [vmem:[%s2450_s6 + $0x4] sm:$0x3]  ;;  %v1067_v36 = vadd.f32 %v2233_v54, %v2284_v25  ;;  %vm1318_vm14 = vcmask 97344  }
 0x653   : > { %v1333_v62 = vsel %vm1021_vm4, %v1875_v58, 0  ;;  %v1452_v27 = vpack.c.bf16 %v1382_v26, %v1380_v22  ;;  %v1453_v3 = vpack.c.bf16 %v1385_v28, %v1385_v28 }
 0x654   : > { %v1263_v43 = vmul.f32 %v1990_v34, %v1262_v41  ;;  %v1275_v44 = vpack.c.bf16 %v1259_v9, %v1244_v40  ;;  %1342 = vmatpush.bf16.msra.mxu1 %v1333_v62 }
 0x656   : > { %1873 = vmatmul.msk.bf16.vlgmr.msra.gmra.mxu0 %vm648_vm2, %v1275_v44  ;;  %v1264_v45 = vadd.f32 %v1990_v34, %v1263_v43 }
 0x658   : > { %v1268_v51 = vsel %vm1267_vm5, %v1990_v34, %v1264_v45  ;;  %1474 = vmatpush.bf16.xpose.msrb.mxu1 %v1466_v55  ;;  %v1386_v2 = vpop.f32.mrf.mxu2 }
 0x659   : > { %v1273_v53 = vsel %vm1270_vm6, %v1272_v52, %v1268_v51 }
 0x65a   : > { %v1274_v60 = vmul.f32 %v2307_v4, %v1273_v53  ;;  %v1412_v4 = vadd.f32 %v1951_v1, %v1411_v63 }
 0x65c   : > { %v1276_v46 = vpack.c.bf16 %v1274_v60, %v1274_v60  ;;  %v1454_v12 = vpack.c.bf16 %v1414_v11, %v1412_v4 }
 0x65e   : > { %v1463_v13 = vsel %vm614_vm1, %v1454_v12, 0 }
 0x660   : > { %1475 = vmatpush.bf16.xpose.msrb.mxu1 %v1463_v13 }
 0x666   : > { %1874 = vmatmul.msk.bf16.gmra.mxu0 %vm648_vm2, %v1276_v46 }
 0x676   : > { %1903 = vmatmul.msk.bf16.vlgmr.msrb.gmra.mxu0 %vm497_vm0, %v2139_v33 }
 0x686   : > { %1904 = vmatmul.msk.bf16.gmra.mxu0 %vm497_vm0, %v2147_v42 }
 0x6d3   : > { %v2340_v15 = vpop.f32.mrf.mxu0 }
 0x6db   : > { %v2342_v16 = vpop.f32.mrf.mxu0 }
 0x6dc   : > { %v1322_v17 = vpack.c.bf16 %v2342_v16, %v2340_v15 }
 0x6de   : > { %1876 = vmatmul.msk.bf16.vlgmr.msra.gmra.mxu1 %vm614_vm1, %v1322_v17 }
 0x6e3   : > { %v2347_v19 = vpop.f32.mrf.mxu0 }
 0x6e4   : > { %v1323_v8 = vpack.c.bf16 %v2347_v19, %v2347_v19 }
 0x6eb   : > { %v1304_v20 = vpop.f32.mrf.mxu0 }
 0x6ec   : > { %v1909_v20 = vld [vmem:[%s2450_s6 + $0x6] sm:$0x3] }
 0x6ee   : > { %1877 = vmatmul.msk.bf16.gmra.mxu1 %vm614_vm1, %v1323_v8 }
 0x6f3   : > { %v1443_v6 = vpop.f32.mrf.mxu0 }
 0x6f4   : > { %v1444_v55 = vadd.f32 %v1953_v10, %v1443_v6 }
 0x6fb   : > { %v1445_v7 = vpop.f32.mrf.mxu0 }
 0x6fc   : > { %v1446_v12 = vadd.f32 %v1953_v10, %v1445_v7 }
 0x6fe   : > { %1905 = vmatmul.msk.bf16.vlgmr.msrb.gmra.mxu1 %vm614_vm1, %v1452_v27  ;;  %v1563_v14 = vpack.c.bf16 %v1446_v12, %v1444_v55  ;;  %v1954_v55 = vld [vmem:[%s2454_s10] ss:$0 sm:$0xff] }
 0x703   : > { %v1448_v4 = vpop.f32.mrf.mxu0 }
 0x704   : > { %v1449_v11 = vadd.f32 %v1953_v10, %v1448_v4 }
 0x706   : > { %v1564_v61 = vpack.c.bf16 %v1449_v11, %v1449_v11 }
 0x708   : > { %v1572_v13 = vsel %vm731_vm3, %v1564_v61, 0 }
 0x709   : > { %1580 = vmatpush.bf16.msrb.mxu2 %v1572_v13 }
 0x70d   : > { %1581 = vmatpush.bf16.msrb.mxu2 %v1563_v14 }
 0x70e   : > { %1906 = vmatmul.msk.bf16.gmra.mxu1 %vm614_vm1, %v1453_v3 }
 0x75b   : > { %v1344_v30 = vpop.f32.mrf.mxu1 }
 0x75c   : > { %v2359_v31 = vadd.f32 %v1344_v30, %v1062_v29 }
 0x763   : > { %v1346_v34 = vpop.f32.mrf.mxu1 }
 0x764   : > { %v2363_v35 = vadd.f32 %v1346_v34, %v1064_v32 }
 0x76b   : > { %v1349_v37 = vpop.f32.mrf.mxu1 }
 0x76c   : > { %v2367_v38 = vadd.f32 %v1349_v37, %v1067_v36 }
 0x773   : > { %v1351_v39 = vpop.f32.mrf.mxu1 }
 0x77b   : > { %v1477_v23 = vpop.f32.mrf.mxu1 }
 0x77c   : > { %v1486_v50 = vmul.f32 0.5, %v1477_v23 }
 0x77e   : > { %v1489_v24 = vsel %vm648_vm2, %v1486_v50, -inf }
 0x77f   : > { %1490 = vmax.xlane.f32.xlu0 %v1489_v24 }
 0x783   : > { %v1479_v40 = vpop.f32.mrf.mxu1 }
 0x784   : > { %v1487_v9 = vmul.f32 0.5, %v1479_v40 }
 0x786   : > { %v1492_v54 = vsel %vm648_vm2, %v1487_v9, -inf }
 0x787   : > { %1493 = vmax.xlane.f32.xlu1 %v1492_v54 }
 0x78b   : > { %v1482_v25 = vpop.f32.mrf.mxu1 }
 0x78c   : > { %v1488_v41 = vmul.f32 0.5, %v1482_v25 }
 0x78e   : > { %v1495_v43 = vsel %vm648_vm2, %v1488_v41, -inf }
 0x78f   : > { %1496 = vmax.xlane.f32.xlu2 %v1495_v43 }
 0x793   : > { %v1484_v44 = vpop.f32.mrf.mxu1 }
 0x7f2   : > { %v1491_v33 = vpop.xlane.xlu0 %1490 }
 0x7f3   : > { %v1498_v45 = vsub.f32 %v1486_v50, %v1491_v33 }
 0x7f5   : > { %v1501_v47 = vmul.f32 1.442695, %v1498_v45 }
 0x7f7   : > { %1991 = vpow2.f32 %v1501_v47 }
 0x7fa   : > { %v1494_v48 = vpop.xlane.xlu1 %1493 }
 0x7fb   : > { %v1499_v51 = vsub.f32 %v1487_v9, %v1494_v48 }
 0x7fd   : > { %v2379_v52 = vpop.eup %1991  ;;  %v1503_v53 = vmul.f32 1.442695, %v1499_v51 }
 0x7fe   : > { %v1507_v60 = vsel %vm648_vm2, %v2379_v52, 0.0 }
 0x7ff   : > { %1993 = vpow2.f32 %v1503_v53  ;;  %1508 = vadd.xlane.f32.xlu0 %v1507_v60 }
 0x802   : > { %v1497_v42 = vpop.xlane.xlu2 %1496 }
 0x803   : > { %v1500_v46 = vsub.f32 %v1488_v41, %v1497_v42 }
 0x805   : > { %v2383_v58 = vpop.eup %1993  ;;  %v1505_v62 = vmul.f32 1.442695, %v1500_v46 }
 0x806   : > { %v1510_v63 = vsel %vm648_vm2, %v2383_v58, 0.0 }
 0x807   : > { %1995 = vpow2.f32 %v1505_v62  ;;  %1511 = vadd.xlane.f32.xlu1 %v1510_v63 }
 0x80d   : > { %v2387_v0 = vpop.eup %1995 }
 0x80e   : > { %v1513_v1 = vsel %vm648_vm2, %v2387_v0, 0.0 }
 0x80f   : > { %1514 = vadd.xlane.f32.xlu2 %v1513_v1 }
 0x813   : > { %998 = vrot.lane.b32.xlu0 %v2258_v56, %s2011_s27  ;;  %v1450_v56 = vpop.f32.mrf.mxu0 }
 0x81b   : > { %1309 = vrot.lane.b32.xlu0 %v2340_v15, %s2012_s30 }
 0x820   : > { %1000 = vrot.lane.b32.xlu1 %v2260_v57, %s2011_s27 }
 0x827   : > { %1002 = vrot.lane.b32.xlu2 %v2265_v59, %s2011_s27  ;;  %v1619_v59 = vsel %vm1021_vm4, %v1909_v20, 0 }
 0x828   : > { %1313 = vrot.lane.b32.xlu1 %v2347_v19, %s2012_s30  ;;  %1628 = vmatpush.bf16.msrb.mxu3 %v1619_v59 }
 0x82f   : > { %1311 = vrot.lane.b32.xlu2 %v2342_v16, %s2012_s30 }
 0x872   : > { %v1509_v15 = vpop.xlane.xlu0 %1508 }
 0x873   : > { %1997 = vrcp.f32 %v1509_v15  ;;  %v1527_v22 = vand.u32 2147483648, %v1509_v15  ;;  %vm1521_vm8 = vweird.f32 %v1509_v15  ;;  %v1525_v26 = vand.u32 2147483647, %v1509_v15 }
 0x875   : > { %v1528_v34 = vor.u32 1.1754944e-38, %v1527_v22  ;;  %vm1526_vm4 = vcmp.eq.f32.partialorder %v1525_v26, 8.507059e+37 }
 0x879   : > { %v1998_v5 = vpop.eup %1997 }
 0x87a   : > { %v1517_v57 = vmul.f32 %v1998_v5, %v1509_v15  ;;  %v1512_v17 = vpop.xlane.xlu1 %1511  ;;  %vm1522_vm3 = vweird.f32 %v1998_v5 }
 0x87b   : > { %1999 = vrcp.f32 %v1512_v17  ;;  %vm1523_vm9 = vmor %vm1521_vm8, %vm1522_vm3  ;;  %v1542_v28 = vand.u32 2147483648, %v1512_v17  ;;  %v1540_v32 = vand.u32 2147483647, %v1512_v17  ;;  %vm1536_vm11 = vweird.f32 %v1512_v17 }
 0x87c   : > { %v1518_v18 = vsub.f32 1.0, %v1517_v57 }
 0x87d   : > { %v1543_v49 = vor.u32 1.1754944e-38, %v1542_v28  ;;  %vm1541_vm13 = vcmp.eq.f32.partialorder %v1540_v32, 8.507059e+37 }
 0x87e   : > { %v1519_v2 = vmul.f32 %v1998_v5, %v1518_v18 }
 0x880   : > { %v1520_v21 = vadd.f32 %v1998_v5, %v1519_v2 }
 0x881   : > { %v2000_v8 = vpop.eup %1999 }
 0x882   : > { %v1532_v19 = vmul.f32 %v2000_v8, %v1512_v17  ;;  %v1515_v16 = vpop.xlane.xlu2 %1514  ;;  %v1524_v29 = vsel %vm1523_vm9, %v1998_v5, %v1520_v21  ;;  %vm1537_vm10 = vweird.f32 %v2000_v8 }
 0x883   : > { %2001 = vrcp.f32 %v1515_v16  ;;  %v1529_v39 = vsel %vm1526_vm4, %v1528_v34, %v1524_v29  ;;  %vm1538_vm12 = vmor %vm1536_vm11, %vm1537_vm10  ;;  %v1557_v45 = vand.u32 2147483648, %v1515_v16  ;;  %vm1551_vm5 = vweird.f32 %v1515_v16 }
 0x884   : > { %v1533_v27 = vsub.f32 1.0, %v1532_v19  ;;  %v1530_v9 = vmul.f32 %v2379_v52, %v1529_v39  ;;  %v1555_v51 = vand.u32 2147483647, %v1515_v16 }
 0x885   : > { %v999_v3 = vpop.permute.xlu0 %998  ;;  %v1558_v53 = vor.u32 1.1754944e-38, %v1557_v45 }
 0x886   : > { %v1534_v30 = vmul.f32 %v2000_v8, %v1533_v27  ;;  %1008 = vst.msk [vmem:[%s2212_s29] sm:$0xff] %vm1007_vm7, %v999_v3  ;;  %vm1556_vm3 = vcmp.eq.f32.partialorder %v1555_v51, 8.507059e+37 }
 0x888   : > { %v1535_v36 = vadd.f32 %v2000_v8, %v1534_v30 }
 0x889   : > { %v2002_v37 = vpop.eup %2001 }
 0x88a   : > { %v1539_v23 = vsel %vm1538_vm12, %v2000_v8, %v1535_v36  ;;  %v1547_v50 = vmul.f32 %v2002_v37, %v1515_v16  ;;  %v1003_v24 = vpop.permute.xlu2 %1002  ;;  %vm1552_vm15 = vweird.f32 %v2002_v37 }
 0x88b   : > { %v1544_v40 = vsel %vm1541_vm13, %v1543_v49, %v1539_v23  ;;  %1010 = vst.msk [vmem:[%s2212_s29 + $0x10] sm:$0xff] %vm1007_vm7, %v1003_v24  ;;  %vm1553_vm6 = vmor %vm1551_vm5, %vm1552_vm15 }
 0x88c   : > { %v1545_v54 = vmul.f32 %v2383_v58, %v1544_v40  ;;  %v1548_v25 = vsub.f32 1.0, %v1547_v50 }
 0x88d   : > { %v1310_v41 = vpop.permute.xlu0 %1309 }
 0x88e   : > { %v1549_v43 = vmul.f32 %v2002_v37, %v1548_v25  ;;  %1319 = vst.msk [vmem:[%s2212_s29] sm:$0xff] %vm1318_vm14, %v1310_v41  ;;  %v1561_v44 = vpack.c.bf16 %v1545_v54, %v1530_v9 }
 0x890   : > { %1907 = vmatmul.msk.bf16.vlgmr.msrb.gmra.mxu2 %vm648_vm2, %v1561_v44  ;;  %v1550_v33 = vadd.f32 %v2002_v37, %v1549_v43 }
 0x892   : > { %v1001_v47 = vpop.permute.xlu1 %1000  ;;  %v1312_v48 = vpop.permute.xlu2 %1311  ;;  %v1554_v52 = vsel %vm1553_vm6, %v2002_v37, %v1550_v33 }
 0x893   : > { %1009 = vst.msk [vmem:[%s2212_s29 + $0x8] sm:$0xff] %vm1007_vm7, %v1001_v47  ;;  %v1559_v60 = vsel %vm1556_vm3, %v1558_v53, %v1554_v52  ;;  %vm1604_vm7 = vcmask 130144  }
 0x894   : > { %1320 = vst.msk [vmem:[%s2212_s29 + $0x8] sm:$0xff] %vm1318_vm14, %v1312_v48  ;;  %v1560_v46 = vmul.f32 %v2387_v0, %v1559_v60 }
 0x896   : > { %v1562_v58 = vpack.c.bf16 %v1560_v46, %v1560_v46 }
 0x89a   : > { %v1314_v42 = vpop.permute.xlu1 %1313 }
 0x89b   : > { %1321 = vst.msk [vmem:[%s2212_s29 + $0x10] sm:$0xff] %vm1318_vm14, %v1314_v42 }
 0x8a0   : > { %1908 = vmatmul.msk.bf16.gmra.mxu2 %vm648_vm2, %v1562_v58 }
 0x913   : > { %v1583_v62 = vpop.f32.mrf.mxu2 }
 0x914   : > { %1595 = vrot.lane.b32.xlu0 %v1583_v62, %s2013_s17 }
 0x91b   : > { %v1585_v63 = vpop.f32.mrf.mxu2 }
 0x91c   : > { %v1608_v1 = vpack.c.bf16 %v1585_v63, %v1583_v62  ;;  %1597 = vrot.lane.b32.xlu2 %v1585_v63, %s2013_s17 }
 0x91e   : > { %1910 = vmatmul.msk.bf16.vlgmr.msrb.gmra.mxu3 %vm614_vm1, %v1608_v1 }
 0x923   : > { %v1588_v6 = vpop.f32.mrf.mxu2 }
 0x924   : > { %1599 = vrot.lane.b32.xlu1 %v1588_v6, %s2013_s17  ;;  %v1609_v7 = vpack.c.bf16 %v1588_v6, %v1588_v6 }
 0x92b   : > { %v1590_v0 = vpop.f32.mrf.mxu2 }
 0x92e   : > { %1911 = vmatmul.msk.bf16.gmra.mxu3 %vm614_vm1, %v1609_v7 }
 0x976   : > { %v1598_v10 = vpop.permute.xlu2 %1597 }
 0x977   : > { %1606 = vst.msk [vmem:[%s2212_s29 + $0x8] sm:$0xff] %vm1604_vm7, %v1598_v10 }
 0x986   : > { %v1596_v4 = vpop.permute.xlu0 %1595 }
 0x987   : > { %1605 = vst.msk [vmem:[%s2212_s29] sm:$0xff] %vm1604_vm7, %v1596_v4 }
 0x996   : > { %v1600_v11 = vpop.permute.xlu1 %1599 }
 0x997   : > { %1607 = vst.msk [vmem:[%s2212_s29 + $0x10] sm:$0xff] %vm1604_vm7, %v1600_v11 }
 0x9a1   : > { %v1630_v12 = vpop.f32.mrf.mxu3 }
 0x9a2   : > { %v1639_v61 = vadd.f32 %v1630_v12, %v2359_v31 }
 0x9a4   : > { %v1646_v13 = vadd.f32 %v1954_v55, %v1639_v61 }
 0x9a6   : > { %1649 = vst.msk [vmem:[%s461_s24] sm:$0xff] %vm497_vm0, %v1646_v13 }
 0x9a9   : > { %v1632_v14 = vpop.f32.mrf.mxu3 }
 0x9aa   : > { %v1640_v56 = vadd.f32 %v1632_v14, %v2363_v35 }
 0x9ac   : > { %v1647_v15 = vadd.f32 %v1954_v55, %v1640_v56 }
 0x9ae   : > { %1650 = vst.msk [vmem:[%s461_s24 + $0x8] sm:$0xff] %vm497_vm0, %v1647_v15 }
 0x9b1   : > { %v1635_v5 = vpop.f32.mrf.mxu3 }
 0x9b2   : > { %v1641_v57 = vadd.f32 %v1635_v5, %v2367_v38 }
 0x9b4   : > { %v1648_v17 = vadd.f32 %v1954_v55, %v1641_v57 }
 0x9b6   : > { %1651 = vst.msk [vmem:[%s461_s24 + $0x10] sm:$0xff] %vm497_vm0, %v1648_v17 }
 0x9b9   : > { %v1637_v31 = vpop.f32.mrf.mxu3 }
 0x9ba PF: > { %s23_s21 = sadd.s32 1, %s2009_s21  }
 0x9bb   : > { %p20_p4 = scmp.ge.s32.totalorder %s23_s21, 4  }
 0x9bd   :  { %22 = sbr.rel (!%p20_p4) target bundleno = 1 (0x1), region = 133 }

</bundles_post_ra>
